<compile_context>
chip_gen: v7x
topology: tpu7x:2x2x1
jax: 0.10.0
libtpu: 0.0.40
codegen_flags: <defaults>
</compile_context>

<pallas_src>
import numpy as np
import jax
import jax.numpy as jnp
from jax.experimental import pallas as pl
from jax.experimental.pallas import tpu as pltpu


# --------------------------- host-side helpers ---------------------------
def _upsample_matrix(n_in, n_out):
    """1-D bilinear interpolation matrix matching F.interpolate(align_corners=True)."""
    if n_out == 1:
        A = np.zeros((1, n_in), dtype=np.float64)
        A[0, 0] = 1.0
        return A.astype(np.float32)
    src = np.arange(n_out, dtype=np.float64) * (n_in - 1) / (n_out - 1)
    lo = np.clip(np.floor(src).astype(np.int64), 0, n_in - 1)
    hi = np.clip(lo + 1, 0, n_in - 1)
    frac = src - lo
    A = np.zeros((n_out, n_in), dtype=np.float64)
    rows = np.arange(n_out)
    np.add.at(A, (rows, lo), 1.0 - frac)
    np.add.at(A, (rows, hi), frac)
    return A.astype(np.float32)


# ------------------------------ wrapper + kernel ------------------------------
def rupsampling_forward(x, rec_attn, w1, bn1, w2, bn2, eps=1e-5):
    """x: (B, C, H, W); rec_attn: (B, C, 2H, 2W).
    w1: (C, C) 1x1 conv weight (bias=False); w2: (C, 2) grouped 1x1 conv weight
    (groups=C, 2 input channels per group, bias=False).
    bn1 / bn2: (gamma, beta, running_mean, running_var) -- inference (folded)."""
    B, C, H, W = x.shape
    Ho, Wo = 2 * H, 2 * W

    # ---------------- host folds (inference constants, numpy) ----------------
    g1, be1, m1, v1 = [np.asarray(t, np.float32) for t in bn1]
    g2, be2, m2, v2 = [np.asarray(t, np.float32) for t in bn2]
    w1_np = np.asarray(w1, np.float32)
    w2_np = np.asarray(w2, np.float32)

    s1 = g1 / np.sqrt(v1 + eps)
    w1f = w1_np * s1[:, None]                       # BN1 folded into conv1
    b1f = be1 - s1 * m1

    s2 = g2 / np.sqrt(v2 + eps)
    sA = s2 * w2_np[:, 0]                           # BN2 folded into the 2 taps
    sB = s2 * w2_np[:, 1]
    b2f = be2 - s2 * m2

    # channel shuffle (groups = C): out[i] = z[src[i]]  =>  store z[o] at dst[o]
    groups, cpg = C, C // C
    src = np.array([(i % groups) * cpg + (i // groups) for i in range(C)])
    dst = np.empty(C, dtype=np.int64)
    dst[src] = np.arange(C)

    w1c = [[float(w1f[o, c]) for c in range(C)] for o in range(C)]
    b1c = [float(v) for v in b1f]
    sAc = [float(v) for v in sA]
    sBc = [float(v) for v in sB]
    b2c = [float(v) for v in b2f]
    dstc = [int(v) for v in dst]

    # tiny separable upsample matrices (replace the old O((HW)^2) kron matrix)
    ah = jnp.asarray(_upsample_matrix(H, Ho))       # (2H, H)
    awT = jnp.asarray(_upsample_matrix(W, Wo).T)    # (W, 2W)

    # grid: >= 2 parallel batch chunks when possible (two v7x TensorCores);
    # each step stacks Bc batch items (v5e/v6e just run the 2 steps back-to-back).
    gsteps = 2 if (B >= 2 and B % 2 == 0) else B
    Bc = B // gsteps

    def kernel(x_ref, attn_ref, ah_ref, awT_ref, o_ref):
        x4 = x_ref[...]                            # (Bc, C, H, W)
        attn4 = attn_ref[...]                      # (Bc, C, 2H, 2W)

        # ---- conv1 (1x1) + BN1 (folded) + GELU : per-channel VPU FMAs ----
        y_ch = []
        for o in range(C):
            acc = w1c[o][0] * x4[:, 0]
            for c in range(1, C):
                acc = acc + w1c[o][c] * x4[:, c]
            y_ch.append(jax.nn.gelu(acc + b1c[o], approximate=True))
        y = jnp.stack(y_ch, axis=1)                # (Bc, C, H, W)

        # ---- separable bilinear x2 upsample (align_corners=True), MXU ----
        G = Bc * C
        y3 = y.reshape(G, H, W)                    # leading-dim merge (free)
        ahb = jnp.broadcast_to(ah_ref[...], (G, Ho, H))
        up_h = jax.lax.dot_general(                # contract H: (G,2H,H)@(G,H,W)
            ahb, y3,
            dimension_numbers=(((2,), (1,)), ((0,), (0,))),
            preferred_element_type=jnp.float32)    # (G, 2H, W)
        awb = jnp.broadcast_to(awT_ref[...], (G, W, Wo))
        up = jax.lax.dot_general(                  # contract W: (G,2H,W)@(G,W,2W)
            up_h, awb,
            dimension_numbers=(((2,), (1,)), ((0,), (0,))),
            preferred_element_type=jnp.float32)    # (G, 2H, 2W)
        up4 = up.reshape(Bc, C, Ho, Wo)            # leading-dim split (free)

        # ---- attn gate + grouped 1x1 conv (true 2-tap) + BN2 + GELU + shuffle ----
        # cat = [up*attn ; up] along channels; group o reads cat[2o], cat[2o+1].
        for o in range(C):
            taps = []
            for k in range(2):
                j = 2 * o + k
                if j < C:
                    taps.append(up4[:, j] * attn4[:, j])   # xa branch
                else:
                    taps.append(up4[:, j - C])             # residual branch
            z = sAc[o] * taps[0] + sBc[o] * taps[1] + b2c[o]
            z = jax.nn.gelu(z, approximate=True)
            o_ref[:, dstc[o]] = z                          # channel shuffle via store

    out = pl.pallas_call(
        kernel,
        out_shape=jax.ShapeDtypeStruct((B, C, Ho, Wo), jnp.float32),
        grid=(gsteps,),
        in_specs=[
            pl.BlockSpec((Bc, C, H, W), lambda g: (g, 0, 0, 0)),      # x (natural NCHW)
            pl.BlockSpec((Bc, C, Ho, Wo), lambda g: (g, 0, 0, 0)),    # rec_attn
            pl.BlockSpec((Ho, H), lambda g: (0, 0)),                  # Ah   (2H, H)
            pl.BlockSpec((W, Wo), lambda g: (0, 0)),                  # Aw^T (W, 2W)
        ],
        out_specs=pl.BlockSpec((Bc, C, Ho, Wo), lambda g: (g, 0, 0, 0)),
        compiler_params=pltpu.CompilerParams(
            dimension_semantics=("parallel",)),
    )(x, rec_attn, ah, awT)
    return out


# ------------------------- pure-JAX reference (torch-style) -------------------------
def _reference_forward(x, rec_attn, w1, bn1, w2, bn2, eps=1e-5):
    B, C, H, W = x.shape
    g1, be1, m1, v1 = bn1
    g2, be2, m2, v2 = bn2
    hp = jax.lax.Precision.HIGHEST

    y = jnp.einsum('oc,bchw->bohw', w1, x, precision=hp)
    y = (y - m1[None, :, None, None]) * (g1 / jnp.sqrt(v1 + eps))[None, :, None, None] \
        + be1[None, :, None, None]
    y = jax.nn.gelu(y, approximate=True)

    Ah = jnp.asarray(_upsample_matrix(H, 2 * H))
    Aw = jnp.asarray(_upsample_matrix(W, 2 * W))
    up = jnp.einsum('Yh,bchw->bcYw', Ah, y, precision=hp)
    up = jnp.einsum('Xw,bcyw->bcyX', Aw, up, precision=hp)

    xa = up * rec_attn
    cat = jnp.concatenate([xa, up], axis=1)                           # (B, 2C, 2H, 2W)
    # grouped 1x1 conv, groups=C: out[o] = w2[o,0]*cat[2o] + w2[o,1]*cat[2o+1]
    z = (w2[:, 0][None, :, None, None] * cat[:, 0::2]
         + w2[:, 1][None, :, None, None] * cat[:, 1::2])
    z = (z - m2[None, :, None, None]) * (g2 / jnp.sqrt(v2 + eps))[None, :, None, None] \
        + be2[None, :, None, None]
    z = jax.nn.gelu(z, approximate=True)
    groups = C
    cpg = C // groups
    perm = jnp.asarray([(i % groups) * cpg + (i // groups) for i in range(C)])
    return z[:, perm]


if __name__ == "__main__":
    B, inp, H, W = 2, 4, 16, 16
    key = jax.random.PRNGKey(0)
    ks = jax.random.split(key, 12)

    x = jax.random.normal(ks[0], (B, inp, H, W), dtype=jnp.float32)
    rec_attn = jax.random.normal(ks[1], (B, inp, 2 * H, 2 * W), dtype=jnp.float32)

    # conv weights (kaiming-like), BN params non-trivial to exercise the BN fold
    w1 = jax.random.normal(ks[2], (inp, inp), dtype=jnp.float32) * (2.0 / inp) ** 0.5
    w2 = jax.random.normal(ks[3], (inp, 2), dtype=jnp.float32) * (2.0 / 2) ** 0.5
    bn1 = (1.0 + 0.1 * jax.random.normal(ks[4], (inp,), jnp.float32),
           0.1 * jax.random.normal(ks[5], (inp,), jnp.float32),
           0.1 * jax.random.normal(ks[6], (inp,), jnp.float32),
           1.0 + 0.5 * jnp.abs(jax.random.normal(ks[7], (inp,), jnp.float32)))
    bn2 = (1.0 + 0.1 * jax.random.normal(ks[8], (inp,), jnp.float32),
           0.1 * jax.random.normal(ks[9], (inp,), jnp.float32),
           0.1 * jax.random.normal(ks[10], (inp,), jnp.float32),
           1.0 + 0.5 * jnp.abs(jax.random.normal(ks[11], (inp,), jnp.float32)))

    out = rupsampling_forward(x, rec_attn, w1, bn1, w2, bn2)
    out = jax.block_until_ready(out)
    assert out.shape == (B, inp, 2 * H, 2 * W), out.shape

    ref = _reference_forward(x, rec_attn, w1, bn1, w2, bn2)
    ref = jax.block_until_ready(ref)
    max_err = float(jnp.max(jnp.abs(out - ref)))
    assert jnp.allclose(out, ref, atol=1e-2, rtol=1e-2), max_err

    print("KERNEL_OK")
</pallas_src>

<mosaic_0001>
module attributes {stable_mosaic.version = 11 : i64} {
  func.func @kernel(%arg0: i32, %arg1: memref<1x4x16x16xf32, #tpu.memory_space<vmem>>, %arg2: memref<1x4x32x32xf32, #tpu.memory_space<vmem>>, %arg3: memref<32x16xf32, #tpu.memory_space<vmem>>, %arg4: memref<16x32xf32, #tpu.memory_space<vmem>>, %arg5: memref<1x4x32x32xf32, #tpu.memory_space<vmem>>) attributes {dimension_semantics = [#tpu.dimension_semantics<parallel>], iteration_bounds = array<i64: 2>, scalar_prefetch = 0 : i64, scratch_operands = 0 : i64, tpu.core_type = #tpu.core_type<tc>, window_params = [{transform_indices = @transform_0, window_bounds = array<i64: 1, 4, 16, 16>}, {transform_indices = @transform_1, window_bounds = array<i64: 1, 4, 32, 32>}, {pipeline_mode = #tpu.pipeline_mode<synchronous>, transform_indices = @transform_2, window_bounds = array<i64: 32, 16>}, {pipeline_mode = #tpu.pipeline_mode<synchronous>, transform_indices = @transform_3, window_bounds = array<i64: 16, 32>}, {transform_indices = @transform_4, window_bounds = array<i64: 1, 4, 32, 32>}]} {
    %c0 = arith.constant 0 : index
    %c0_0 = arith.constant 0 : index
    %c0_1 = arith.constant 0 : index
    %c0_2 = arith.constant 0 : index
    %0 = vector.load %arg1[%c0, %c0_0, %c0_1, %c0_2] : memref<1x4x16x16xf32, #tpu.memory_space<vmem>>, vector<1x4x16x16xf32>
    %c0_3 = arith.constant 0 : index
    %c0_4 = arith.constant 0 : index
    %c0_5 = arith.constant 0 : index
    %c0_6 = arith.constant 0 : index
    %1 = vector.load %arg2[%c0_3, %c0_4, %c0_5, %c0_6] : memref<1x4x32x32xf32, #tpu.memory_space<vmem>>, vector<1x4x32x32xf32>
    %2 = vector.extract_strided_slice %0 {offsets = [0, 0, 0, 0], sizes = [1, 1, 16, 16], strides = [1, 1, 1, 1]} : vector<1x4x16x16xf32> to vector<1x1x16x16xf32>
    %3 = vector.shape_cast %2 : vector<1x1x16x16xf32> to vector<1x16x16xf32>
    %cst = arith.constant 0.810042679 : f32
    %4 = vector.broadcast %cst : f32 to vector<1x16x16xf32>
    %5 = arith.mulf %4, %3 : vector<1x16x16xf32>
    %6 = vector.extract_strided_slice %0 {offsets = [0, 1, 0, 0], sizes = [1, 1, 16, 16], strides = [1, 1, 1, 1]} : vector<1x4x16x16xf32> to vector<1x1x16x16xf32>
    %7 = vector.shape_cast %6 : vector<1x1x16x16xf32> to vector<1x16x16xf32>
    %cst_7 = arith.constant 0.847164094 : f32
    %8 = vector.broadcast %cst_7 : f32 to vector<1x16x16xf32>
    %9 = arith.mulf %8, %7 : vector<1x16x16xf32>
    %10 = arith.addf %5, %9 : vector<1x16x16xf32>
    %11 = vector.extract_strided_slice %0 {offsets = [0, 2, 0, 0], sizes = [1, 1, 16, 16], strides = [1, 1, 1, 1]} : vector<1x4x16x16xf32> to vector<1x1x16x16xf32>
    %12 = vector.shape_cast %11 : vector<1x1x16x16xf32> to vector<1x16x16xf32>
    %cst_8 = arith.constant -0.256088883 : f32
    %13 = vector.broadcast %cst_8 : f32 to vector<1x16x16xf32>
    %14 = arith.mulf %13, %12 : vector<1x16x16xf32>
    %15 = arith.addf %10, %14 : vector<1x16x16xf32>
    %16 = vector.extract_strided_slice %0 {offsets = [0, 3, 0, 0], sizes = [1, 1, 16, 16], strides = [1, 1, 1, 1]} : vector<1x4x16x16xf32> to vector<1x1x16x16xf32>
    %17 = vector.shape_cast %16 : vector<1x1x16x16xf32> to vector<1x16x16xf32>
    %cst_9 = arith.constant -0.482589394 : f32
    %18 = vector.broadcast %cst_9 : f32 to vector<1x16x16xf32>
    %19 = arith.mulf %18, %17 : vector<1x16x16xf32>
    %20 = arith.addf %15, %19 : vector<1x16x16xf32>
    %cst_10 = arith.constant -0.0391363874 : f32
    %21 = vector.broadcast %cst_10 : f32 to vector<1x16x16xf32>
    %22 = arith.addf %20, %21 : vector<1x16x16xf32>
    %23 = arith.mulf %22, %22 : vector<1x16x16xf32>
    %24 = arith.mulf %22, %23 : vector<1x16x16xf32>
    %cst_11 = arith.constant 4.471500e-02 : f32
    %25 = vector.broadcast %cst_11 : f32 to vector<1x16x16xf32>
    %26 = arith.mulf %25, %24 : vector<1x16x16xf32>
    %27 = arith.addf %22, %26 : vector<1x16x16xf32>
    %cst_12 = arith.constant 0.797884583 : f32
    %28 = vector.broadcast %cst_12 : f32 to vector<1x16x16xf32>
    %29 = arith.mulf %28, %27 : vector<1x16x16xf32>
    %30 = math.tanh %29 : vector<1x16x16xf32>
    %cst_13 = arith.constant 1.000000e+00 : f32
    %31 = vector.broadcast %cst_13 : f32 to vector<1x16x16xf32>
    %32 = arith.addf %31, %30 : vector<1x16x16xf32>
    %cst_14 = arith.constant 5.000000e-01 : f32
    %33 = vector.broadcast %cst_14 : f32 to vector<1x16x16xf32>
    %34 = arith.mulf %33, %32 : vector<1x16x16xf32>
    %35 = arith.mulf %22, %34 : vector<1x16x16xf32>
    %36 = vector.extract_strided_slice %0 {offsets = [0, 0, 0, 0], sizes = [1, 1, 16, 16], strides = [1, 1, 1, 1]} : vector<1x4x16x16xf32> to vector<1x1x16x16xf32>
    %37 = vector.shape_cast %36 : vector<1x1x16x16xf32> to vector<1x16x16xf32>
    %cst_15 = arith.constant 0.217238247 : f32
    %38 = vector.broadcast %cst_15 : f32 to vector<1x16x16xf32>
    %39 = arith.mulf %38, %37 : vector<1x16x16xf32>
    %40 = vector.extract_strided_slice %0 {offsets = [0, 1, 0, 0], sizes = [1, 1, 16, 16], strides = [1, 1, 1, 1]} : vector<1x4x16x16xf32> to vector<1x1x16x16xf32>
    %41 = vector.shape_cast %40 : vector<1x1x16x16xf32> to vector<1x16x16xf32>
    %cst_16 = arith.constant 0.0107718697 : f32
    %42 = vector.broadcast %cst_16 : f32 to vector<1x16x16xf32>
    %43 = arith.mulf %42, %41 : vector<1x16x16xf32>
    %44 = arith.addf %39, %43 : vector<1x16x16xf32>
    %45 = vector.extract_strided_slice %0 {offsets = [0, 2, 0, 0], sizes = [1, 1, 16, 16], strides = [1, 1, 1, 1]} : vector<1x4x16x16xf32> to vector<1x1x16x16xf32>
    %46 = vector.shape_cast %45 : vector<1x1x16x16xf32> to vector<1x16x16xf32>
    %cst_17 = arith.constant 0.327650249 : f32
    %47 = vector.broadcast %cst_17 : f32 to vector<1x16x16xf32>
    %48 = arith.mulf %47, %46 : vector<1x16x16xf32>
    %49 = arith.addf %44, %48 : vector<1x16x16xf32>
    %50 = vector.extract_strided_slice %0 {offsets = [0, 3, 0, 0], sizes = [1, 1, 16, 16], strides = [1, 1, 1, 1]} : vector<1x4x16x16xf32> to vector<1x1x16x16xf32>
    %51 = vector.shape_cast %50 : vector<1x1x16x16xf32> to vector<1x16x16xf32>
    %cst_18 = arith.constant -0.429569632 : f32
    %52 = vector.broadcast %cst_18 : f32 to vector<1x16x16xf32>
    %53 = arith.mulf %52, %51 : vector<1x16x16xf32>
    %54 = arith.addf %49, %53 : vector<1x16x16xf32>
    %cst_19 = arith.constant 0.110233858 : f32
    %55 = vector.broadcast %cst_19 : f32 to vector<1x16x16xf32>
    %56 = arith.addf %54, %55 : vector<1x16x16xf32>
    %57 = arith.mulf %56, %56 : vector<1x16x16xf32>
    %58 = arith.mulf %56, %57 : vector<1x16x16xf32>
    %cst_20 = arith.constant 4.471500e-02 : f32
    %59 = vector.broadcast %cst_20 : f32 to vector<1x16x16xf32>
    %60 = arith.mulf %59, %58 : vector<1x16x16xf32>
    %61 = arith.addf %56, %60 : vector<1x16x16xf32>
    %cst_21 = arith.constant 0.797884583 : f32
    %62 = vector.broadcast %cst_21 : f32 to vector<1x16x16xf32>
    %63 = arith.mulf %62, %61 : vector<1x16x16xf32>
    %64 = math.tanh %63 : vector<1x16x16xf32>
    %cst_22 = arith.constant 1.000000e+00 : f32
    %65 = vector.broadcast %cst_22 : f32 to vector<1x16x16xf32>
    %66 = arith.addf %65, %64 : vector<1x16x16xf32>
    %cst_23 = arith.constant 5.000000e-01 : f32
    %67 = vector.broadcast %cst_23 : f32 to vector<1x16x16xf32>
    %68 = arith.mulf %67, %66 : vector<1x16x16xf32>
    %69 = arith.mulf %56, %68 : vector<1x16x16xf32>
    %70 = vector.extract_strided_slice %0 {offsets = [0, 0, 0, 0], sizes = [1, 1, 16, 16], strides = [1, 1, 1, 1]} : vector<1x4x16x16xf32> to vector<1x1x16x16xf32>
    %71 = vector.shape_cast %70 : vector<1x1x16x16xf32> to vector<1x16x16xf32>
    %cst_24 = arith.constant 0.117793135 : f32
    %72 = vector.broadcast %cst_24 : f32 to vector<1x16x16xf32>
    %73 = arith.mulf %72, %71 : vector<1x16x16xf32>
    %74 = vector.extract_strided_slice %0 {offsets = [0, 1, 0, 0], sizes = [1, 1, 16, 16], strides = [1, 1, 1, 1]} : vector<1x4x16x16xf32> to vector<1x1x16x16xf32>
    %75 = vector.shape_cast %74 : vector<1x1x16x16xf32> to vector<1x16x16xf32>
    %cst_25 = arith.constant -0.762207686 : f32
    %76 = vector.broadcast %cst_25 : f32 to vector<1x16x16xf32>
    %77 = arith.mulf %76, %75 : vector<1x16x16xf32>
    %78 = arith.addf %73, %77 : vector<1x16x16xf32>
    %79 = vector.extract_strided_slice %0 {offsets = [0, 2, 0, 0], sizes = [1, 1, 16, 16], strides = [1, 1, 1, 1]} : vector<1x4x16x16xf32> to vector<1x1x16x16xf32>
    %80 = vector.shape_cast %79 : vector<1x1x16x16xf32> to vector<1x16x16xf32>
    %cst_26 = arith.constant -0.467925221 : f32
    %81 = vector.broadcast %cst_26 : f32 to vector<1x16x16xf32>
    %82 = arith.mulf %81, %80 : vector<1x16x16xf32>
    %83 = arith.addf %78, %82 : vector<1x16x16xf32>
    %84 = vector.extract_strided_slice %0 {offsets = [0, 3, 0, 0], sizes = [1, 1, 16, 16], strides = [1, 1, 1, 1]} : vector<1x4x16x16xf32> to vector<1x1x16x16xf32>
    %85 = vector.shape_cast %84 : vector<1x1x16x16xf32> to vector<1x16x16xf32>
    %cst_27 = arith.constant 0.903854966 : f32
    %86 = vector.broadcast %cst_27 : f32 to vector<1x16x16xf32>
    %87 = arith.mulf %86, %85 : vector<1x16x16xf32>
    %88 = arith.addf %83, %87 : vector<1x16x16xf32>
    %cst_28 = arith.constant 0.108236551 : f32
    %89 = vector.broadcast %cst_28 : f32 to vector<1x16x16xf32>
    %90 = arith.addf %88, %89 : vector<1x16x16xf32>
    %91 = arith.mulf %90, %90 : vector<1x16x16xf32>
    %92 = arith.mulf %90, %91 : vector<1x16x16xf32>
    %cst_29 = arith.constant 4.471500e-02 : f32
    %93 = vector.broadcast %cst_29 : f32 to vector<1x16x16xf32>
    %94 = arith.mulf %93, %92 : vector<1x16x16xf32>
    %95 = arith.addf %90, %94 : vector<1x16x16xf32>
    %cst_30 = arith.constant 0.797884583 : f32
    %96 = vector.broadcast %cst_30 : f32 to vector<1x16x16xf32>
    %97 = arith.mulf %96, %95 : vector<1x16x16xf32>
    %98 = math.tanh %97 : vector<1x16x16xf32>
    %cst_31 = arith.constant 1.000000e+00 : f32
    %99 = vector.broadcast %cst_31 : f32 to vector<1x16x16xf32>
    %100 = arith.addf %99, %98 : vector<1x16x16xf32>
    %cst_32 = arith.constant 5.000000e-01 : f32
    %101 = vector.broadcast %cst_32 : f32 to vector<1x16x16xf32>
    %102 = arith.mulf %101, %100 : vector<1x16x16xf32>
    %103 = arith.mulf %90, %102 : vector<1x16x16xf32>
    %104 = vector.extract_strided_slice %0 {offsets = [0, 0, 0, 0], sizes = [1, 1, 16, 16], strides = [1, 1, 1, 1]} : vector<1x4x16x16xf32> to vector<1x1x16x16xf32>
    %105 = vector.shape_cast %104 : vector<1x1x16x16xf32> to vector<1x16x16xf32>
    %cst_33 = arith.constant -0.653770804 : f32
    %106 = vector.broadcast %cst_33 : f32 to vector<1x16x16xf32>
    %107 = arith.mulf %106, %105 : vector<1x16x16xf32>
    %108 = vector.extract_strided_slice %0 {offsets = [0, 1, 0, 0], sizes = [1, 1, 16, 16], strides = [1, 1, 1, 1]} : vector<1x4x16x16xf32> to vector<1x1x16x16xf32>
    %109 = vector.shape_cast %108 : vector<1x1x16x16xf32> to vector<1x16x16xf32>
    %cst_34 = arith.constant -0.293836713 : f32
    %110 = vector.broadcast %cst_34 : f32 to vector<1x16x16xf32>
    %111 = arith.mulf %110, %109 : vector<1x16x16xf32>
    %112 = arith.addf %107, %111 : vector<1x16x16xf32>
    %113 = vector.extract_strided_slice %0 {offsets = [0, 2, 0, 0], sizes = [1, 1, 16, 16], strides = [1, 1, 1, 1]} : vector<1x4x16x16xf32> to vector<1x1x16x16xf32>
    %114 = vector.shape_cast %113 : vector<1x1x16x16xf32> to vector<1x16x16xf32>
    %cst_35 = arith.constant 0.555381536 : f32
    %115 = vector.broadcast %cst_35 : f32 to vector<1x16x16xf32>
    %116 = arith.mulf %115, %114 : vector<1x16x16xf32>
    %117 = arith.addf %112, %116 : vector<1x16x16xf32>
    %118 = vector.extract_strided_slice %0 {offsets = [0, 3, 0, 0], sizes = [1, 1, 16, 16], strides = [1, 1, 1, 1]} : vector<1x4x16x16xf32> to vector<1x1x16x16xf32>
    %119 = vector.shape_cast %118 : vector<1x1x16x16xf32> to vector<1x16x16xf32>
    %cst_36 = arith.constant 0.817277848 : f32
    %120 = vector.broadcast %cst_36 : f32 to vector<1x16x16xf32>
    %121 = arith.mulf %120, %119 : vector<1x16x16xf32>
    %122 = arith.addf %117, %121 : vector<1x16x16xf32>
    %cst_37 = arith.constant 0.0872409493 : f32
    %123 = vector.broadcast %cst_37 : f32 to vector<1x16x16xf32>
    %124 = arith.addf %122, %123 : vector<1x16x16xf32>
    %125 = arith.mulf %124, %124 : vector<1x16x16xf32>
    %126 = arith.mulf %124, %125 : vector<1x16x16xf32>
    %cst_38 = arith.constant 4.471500e-02 : f32
    %127 = vector.broadcast %cst_38 : f32 to vector<1x16x16xf32>
    %128 = arith.mulf %127, %126 : vector<1x16x16xf32>
    %129 = arith.addf %124, %128 : vector<1x16x16xf32>
    %cst_39 = arith.constant 0.797884583 : f32
    %130 = vector.broadcast %cst_39 : f32 to vector<1x16x16xf32>
    %131 = arith.mulf %130, %129 : vector<1x16x16xf32>
    %132 = math.tanh %131 : vector<1x16x16xf32>
    %cst_40 = arith.constant 1.000000e+00 : f32
    %133 = vector.broadcast %cst_40 : f32 to vector<1x16x16xf32>
    %134 = arith.addf %133, %132 : vector<1x16x16xf32>
    %cst_41 = arith.constant 5.000000e-01 : f32
    %135 = vector.broadcast %cst_41 : f32 to vector<1x16x16xf32>
    %136 = arith.mulf %135, %134 : vector<1x16x16xf32>
    %137 = arith.mulf %124, %136 : vector<1x16x16xf32>
    %138 = vector.shape_cast %35 : vector<1x16x16xf32> to vector<1x1x16x16xf32>
    %139 = vector.shape_cast %69 : vector<1x16x16xf32> to vector<1x1x16x16xf32>
    %140 = vector.shape_cast %103 : vector<1x16x16xf32> to vector<1x1x16x16xf32>
    %141 = vector.shape_cast %137 : vector<1x16x16xf32> to vector<1x1x16x16xf32>
    %142 = tpu.concatenate %138, %139, %140, %141 in 1 : vector<1x1x16x16xf32>, vector<1x1x16x16xf32>, vector<1x1x16x16xf32>, vector<1x1x16x16xf32> -> vector<1x4x16x16xf32>
    %143 = vector.shape_cast %142 : vector<1x4x16x16xf32> to vector<4x16x16xf32>
    %c0_42 = arith.constant 0 : index
    %c0_43 = arith.constant 0 : index
    %144 = vector.load %arg3[%c0_42, %c0_43] : memref<32x16xf32, #tpu.memory_space<vmem>>, vector<32x16xf32>
    %145 = vector.shape_cast %144 : vector<32x16xf32> to vector<1x32x16xf32>
    %146 = vector.broadcast %145 : vector<1x32x16xf32> to vector<4x32x16xf32>
    %cst_44 = arith.constant dense<0.000000e+00> : vector<4x32x16xf32>
    %147 = tpu.matmul %146, %143, %cst_44 {dimension_numbers = #tpu.dot_dimension_numbers<[2], [1], [1], [2], [0, 0, 0, 1, 1, 2], [0], [0]>} : vector<4x32x16xf32>, vector<4x16x16xf32>, vector<4x32x16xf32> -> vector<4x32x16xf32>
    %c0_45 = arith.constant 0 : index
    %c0_46 = arith.constant 0 : index
    %148 = vector.load %arg4[%c0_45, %c0_46] : memref<16x32xf32, #tpu.memory_space<vmem>>, vector<16x32xf32>
    %149 = vector.shape_cast %148 : vector<16x32xf32> to vector<1x16x32xf32>
    %150 = vector.broadcast %149 : vector<1x16x32xf32> to vector<4x16x32xf32>
    %cst_47 = arith.constant dense<0.000000e+00> : vector<4x32x32xf32>
    %151 = tpu.matmul %147, %150, %cst_47 {dimension_numbers = #tpu.dot_dimension_numbers<[2], [1], [1], [2], [0, 0, 0, 1, 1, 2], [0], [0]>} : vector<4x32x16xf32>, vector<4x16x32xf32>, vector<4x32x32xf32> -> vector<4x32x32xf32>
    %152 = vector.shape_cast %151 : vector<4x32x32xf32> to vector<1x4x32x32xf32>
    %153 = vector.extract_strided_slice %152 {offsets = [0, 0, 0, 0], sizes = [1, 1, 32, 32], strides = [1, 1, 1, 1]} : vector<1x4x32x32xf32> to vector<1x1x32x32xf32>
    %154 = vector.shape_cast %153 : vector<1x1x32x32xf32> to vector<1x32x32xf32>
    %155 = vector.extract_strided_slice %1 {offsets = [0, 0, 0, 0], sizes = [1, 1, 32, 32], strides = [1, 1, 1, 1]} : vector<1x4x32x32xf32> to vector<1x1x32x32xf32>
    %156 = vector.shape_cast %155 : vector<1x1x32x32xf32> to vector<1x32x32xf32>
    %157 = arith.mulf %154, %156 : vector<1x32x32xf32>
    %158 = vector.extract_strided_slice %152 {offsets = [0, 1, 0, 0], sizes = [1, 1, 32, 32], strides = [1, 1, 1, 1]} : vector<1x4x32x32xf32> to vector<1x1x32x32xf32>
    %159 = vector.shape_cast %158 : vector<1x1x32x32xf32> to vector<1x32x32xf32>
    %160 = vector.extract_strided_slice %1 {offsets = [0, 1, 0, 0], sizes = [1, 1, 32, 32], strides = [1, 1, 1, 1]} : vector<1x4x32x32xf32> to vector<1x1x32x32xf32>
    %161 = vector.shape_cast %160 : vector<1x1x32x32xf32> to vector<1x32x32xf32>
    %162 = arith.mulf %159, %161 : vector<1x32x32xf32>
    %cst_48 = arith.constant -0.56841135 : f32
    %163 = vector.broadcast %cst_48 : f32 to vector<1x32x32xf32>
    %164 = arith.mulf %163, %157 : vector<1x32x32xf32>
    %cst_49 = arith.constant 0.57102561 : f32
    %165 = vector.broadcast %cst_49 : f32 to vector<1x32x32xf32>
    %166 = arith.mulf %165, %162 : vector<1x32x32xf32>
    %167 = arith.addf %164, %166 : vector<1x32x32xf32>
    %cst_50 = arith.constant 0.0248315278 : f32
    %168 = vector.broadcast %cst_50 : f32 to vector<1x32x32xf32>
    %169 = arith.addf %167, %168 : vector<1x32x32xf32>
    %170 = arith.mulf %169, %169 : vector<1x32x32xf32>
    %171 = arith.mulf %169, %170 : vector<1x32x32xf32>
    %cst_51 = arith.constant 4.471500e-02 : f32
    %172 = vector.broadcast %cst_51 : f32 to vector<1x32x32xf32>
    %173 = arith.mulf %172, %171 : vector<1x32x32xf32>
    %174 = arith.addf %169, %173 : vector<1x32x32xf32>
    %cst_52 = arith.constant 0.797884583 : f32
    %175 = vector.broadcast %cst_52 : f32 to vector<1x32x32xf32>
    %176 = arith.mulf %175, %174 : vector<1x32x32xf32>
    %177 = math.tanh %176 : vector<1x32x32xf32>
    %cst_53 = arith.constant 1.000000e+00 : f32
    %178 = vector.broadcast %cst_53 : f32 to vector<1x32x32xf32>
    %179 = arith.addf %178, %177 : vector<1x32x32xf32>
    %cst_54 = arith.constant 5.000000e-01 : f32
    %180 = vector.broadcast %cst_54 : f32 to vector<1x32x32xf32>
    %181 = arith.mulf %180, %179 : vector<1x32x32xf32>
    %182 = arith.mulf %169, %181 : vector<1x32x32xf32>
    %c0_55 = arith.constant 0 : index
    %c0_56 = arith.constant 0 : index
    %c0_57 = arith.constant 0 : index
    %c0_58 = arith.constant 0 : index
    %183 = vector.load %arg5[%c0_55, %c0_56, %c0_57, %c0_58] : memref<1x4x32x32xf32, #tpu.memory_space<vmem>>, vector<1x1x32x32xf32>
    %184 = vector.shape_cast %183 : vector<1x1x32x32xf32> to vector<1x32x32xf32>
    %185 = vector.shape_cast %182 : vector<1x32x32xf32> to vector<1x1x32x32xf32>
    tpu.vector_store %arg5[%c0_55, %c0_56, %c0_57, %c0_58], %185 {strides = array<i32>} : memref<1x4x32x32xf32, #tpu.memory_space<vmem>>, vector<1x1x32x32xf32>,
    %186 = vector.extract_strided_slice %152 {offsets = [0, 2, 0, 0], sizes = [1, 1, 32, 32], strides = [1, 1, 1, 1]} : vector<1x4x32x32xf32> to vector<1x1x32x32xf32>
    %187 = vector.shape_cast %186 : vector<1x1x32x32xf32> to vector<1x32x32xf32>
    %188 = vector.extract_strided_slice %1 {offsets = [0, 2, 0, 0], sizes = [1, 1, 32, 32], strides = [1, 1, 1, 1]} : vector<1x4x32x32xf32> to vector<1x1x32x32xf32>
    %189 = vector.shape_cast %188 : vector<1x1x32x32xf32> to vector<1x32x32xf32>
    %190 = arith.mulf %187, %189 : vector<1x32x32xf32>
    %191 = vector.extract_strided_slice %152 {offsets = [0, 3, 0, 0], sizes = [1, 1, 32, 32], strides = [1, 1, 1, 1]} : vector<1x4x32x32xf32> to vector<1x1x32x32xf32>
    %192 = vector.shape_cast %191 : vector<1x1x32x32xf32> to vector<1x32x32xf32>
    %193 = vector.extract_strided_slice %1 {offsets = [0, 3, 0, 0], sizes = [1, 1, 32, 32], strides = [1, 1, 1, 1]} : vector<1x4x32x32xf32> to vector<1x1x32x32xf32>
    %194 = vector.shape_cast %193 : vector<1x1x32x32xf32> to vector<1x32x32xf32>
    %195 = arith.mulf %192, %194 : vector<1x32x32xf32>
    %cst_59 = arith.constant 1.40996635 : f32
    %196 = vector.broadcast %cst_59 : f32 to vector<1x32x32xf32>
    %197 = arith.mulf %196, %190 : vector<1x32x32xf32>
    %cst_60 = arith.constant -0.677299857 : f32
    %198 = vector.broadcast %cst_60 : f32 to vector<1x32x32xf32>
    %199 = arith.mulf %198, %195 : vector<1x32x32xf32>
    %200 = arith.addf %197, %199 : vector<1x32x32xf32>
    %cst_61 = arith.constant 0.00376694277 : f32
    %201 = vector.broadcast %cst_61 : f32 to vector<1x32x32xf32>
    %202 = arith.addf %200, %201 : vector<1x32x32xf32>
    %203 = arith.mulf %202, %202 : vector<1x32x32xf32>
    %204 = arith.mulf %202, %203 : vector<1x32x32xf32>
    %cst_62 = arith.constant 4.471500e-02 : f32
    %205 = vector.broadcast %cst_62 : f32 to vector<1x32x32xf32>
    %206 = arith.mulf %205, %204 : vector<1x32x32xf32>
    %207 = arith.addf %202, %206 : vector<1x32x32xf32>
    %cst_63 = arith.constant 0.797884583 : f32
    %208 = vector.broadcast %cst_63 : f32 to vector<1x32x32xf32>
    %209 = arith.mulf %208, %207 : vector<1x32x32xf32>
    %210 = math.tanh %209 : vector<1x32x32xf32>
    %cst_64 = arith.constant 1.000000e+00 : f32
    %211 = vector.broadcast %cst_64 : f32 to vector<1x32x32xf32>
    %212 = arith.addf %211, %210 : vector<1x32x32xf32>
    %cst_65 = arith.constant 5.000000e-01 : f32
    %213 = vector.broadcast %cst_65 : f32 to vector<1x32x32xf32>
    %214 = arith.mulf %213, %212 : vector<1x32x32xf32>
    %215 = arith.mulf %202, %214 : vector<1x32x32xf32>
    %c0_66 = arith.constant 0 : index
    %c1 = arith.constant 1 : index
    %c0_67 = arith.constant 0 : index
    %c0_68 = arith.constant 0 : index
    %216 = vector.load %arg5[%c0_66, %c1, %c0_67, %c0_68] : memref<1x4x32x32xf32, #tpu.memory_space<vmem>>, vector<1x1x32x32xf32>
    %217 = vector.shape_cast %216 : vector<1x1x32x32xf32> to vector<1x32x32xf32>
    %218 = vector.shape_cast %215 : vector<1x32x32xf32> to vector<1x1x32x32xf32>
    tpu.vector_store %arg5[%c0_66, %c1, %c0_67, %c0_68], %218 {strides = array<i32>} : memref<1x4x32x32xf32, #tpu.memory_space<vmem>>, vector<1x1x32x32xf32>,
    %219 = vector.extract_strided_slice %152 {offsets = [0, 0, 0, 0], sizes = [1, 1, 32, 32], strides = [1, 1, 1, 1]} : vector<1x4x32x32xf32> to vector<1x1x32x32xf32>
    %220 = vector.shape_cast %219 : vector<1x1x32x32xf32> to vector<1x32x32xf32>
    %221 = vector.extract_strided_slice %152 {offsets = [0, 1, 0, 0], sizes = [1, 1, 32, 32], strides = [1, 1, 1, 1]} : vector<1x4x32x32xf32> to vector<1x1x32x32xf32>
    %222 = vector.shape_cast %221 : vector<1x1x32x32xf32> to vector<1x32x32xf32>
    %cst_69 = arith.constant -2.48838401 : f32
    %223 = vector.broadcast %cst_69 : f32 to vector<1x32x32xf32>
    %224 = arith.mulf %223, %220 : vector<1x32x32xf32>
    %cst_70 = arith.constant 0.942203402 : f32
    %225 = vector.broadcast %cst_70 : f32 to vector<1x32x32xf32>
    %226 = arith.mulf %225, %222 : vector<1x32x32xf32>
    %227 = arith.addf %224, %226 : vector<1x32x32xf32>
    %cst_71 = arith.constant -0.242797971 : f32
    %228 = vector.broadcast %cst_71 : f32 to vector<1x32x32xf32>
    %229 = arith.addf %227, %228 : vector<1x32x32xf32>
    %230 = arith.mulf %229, %229 : vector<1x32x32xf32>
    %231 = arith.mulf %229, %230 : vector<1x32x32xf32>
    %cst_72 = arith.constant 4.471500e-02 : f32
    %232 = vector.broadcast %cst_72 : f32 to vector<1x32x32xf32>
    %233 = arith.mulf %232, %231 : vector<1x32x32xf32>
    %234 = arith.addf %229, %233 : vector<1x32x32xf32>
    %cst_73 = arith.constant 0.797884583 : f32
    %235 = vector.broadcast %cst_73 : f32 to vector<1x32x32xf32>
    %236 = arith.mulf %235, %234 : vector<1x32x32xf32>
    %237 = math.tanh %236 : vector<1x32x32xf32>
    %cst_74 = arith.constant 1.000000e+00 : f32
    %238 = vector.broadcast %cst_74 : f32 to vector<1x32x32xf32>
    %239 = arith.addf %238, %237 : vector<1x32x32xf32>
    %cst_75 = arith.constant 5.000000e-01 : f32
    %240 = vector.broadcast %cst_75 : f32 to vector<1x32x32xf32>
    %241 = arith.mulf %240, %239 : vector<1x32x32xf32>
    %242 = arith.mulf %229, %241 : vector<1x32x32xf32>
    %c0_76 = arith.constant 0 : index
    %c2 = arith.constant 2 : index
    %c0_77 = arith.constant 0 : index
    %c0_78 = arith.constant 0 : index
    %243 = vector.load %arg5[%c0_76, %c2, %c0_77, %c0_78] : memref<1x4x32x32xf32, #tpu.memory_space<vmem>>, vector<1x1x32x32xf32>
    %244 = vector.shape_cast %243 : vector<1x1x32x32xf32> to vector<1x32x32xf32>
    %245 = vector.shape_cast %242 : vector<1x32x32xf32> to vector<1x1x32x32xf32>
    tpu.vector_store %arg5[%c0_76, %c2, %c0_77, %c0_78], %245 {strides = array<i32>} : memref<1x4x32x32xf32, #tpu.memory_space<vmem>>, vector<1x1x32x32xf32>,
    %246 = vector.extract_strided_slice %152 {offsets = [0, 2, 0, 0], sizes = [1, 1, 32, 32], strides = [1, 1, 1, 1]} : vector<1x4x32x32xf32> to vector<1x1x32x32xf32>
    %247 = vector.shape_cast %246 : vector<1x1x32x32xf32> to vector<1x32x32xf32>
    %248 = vector.extract_strided_slice %152 {offsets = [0, 3, 0, 0], sizes = [1, 1, 32, 32], strides = [1, 1, 1, 1]} : vector<1x4x32x32xf32> to vector<1x1x32x32xf32>
    %249 = vector.shape_cast %248 : vector<1x1x32x32xf32> to vector<1x32x32xf32>
    %cst_79 = arith.constant 0.814357161 : f32
    %250 = vector.broadcast %cst_79 : f32 to vector<1x32x32xf32>
    %251 = arith.mulf %250, %247 : vector<1x32x32xf32>
    %cst_80 = arith.constant -0.331535816 : f32
    %252 = vector.broadcast %cst_80 : f32 to vector<1x32x32xf32>
    %253 = arith.mulf %252, %249 : vector<1x32x32xf32>
    %254 = arith.addf %251, %253 : vector<1x32x32xf32>
    %cst_81 = arith.constant -0.0220532864 : f32
    %255 = vector.broadcast %cst_81 : f32 to vector<1x32x32xf32>
    %256 = arith.addf %254, %255 : vector<1x32x32xf32>
    %257 = arith.mulf %256, %256 : vector<1x32x32xf32>
    %258 = arith.mulf %256, %257 : vector<1x32x32xf32>
    %cst_82 = arith.constant 4.471500e-02 : f32
    %259 = vector.broadcast %cst_82 : f32 to vector<1x32x32xf32>
    %260 = arith.mulf %259, %258 : vector<1x32x32xf32>
    %261 = arith.addf %256, %260 : vector<1x32x32xf32>
    %cst_83 = arith.constant 0.797884583 : f32
    %262 = vector.broadcast %cst_83 : f32 to vector<1x32x32xf32>
    %263 = arith.mulf %262, %261 : vector<1x32x32xf32>
    %264 = math.tanh %263 : vector<1x32x32xf32>
    %cst_84 = arith.constant 1.000000e+00 : f32
    %265 = vector.broadcast %cst_84 : f32 to vector<1x32x32xf32>
    %266 = arith.addf %265, %264 : vector<1x32x32xf32>
    %cst_85 = arith.constant 5.000000e-01 : f32
    %267 = vector.broadcast %cst_85 : f32 to vector<1x32x32xf32>
    %268 = arith.mulf %267, %266 : vector<1x32x32xf32>
    %269 = arith.mulf %256, %268 : vector<1x32x32xf32>
    %c0_86 = arith.constant 0 : index
    %c3 = arith.constant 3 : index
    %c0_87 = arith.constant 0 : index
    %c0_88 = arith.constant 0 : index
    %270 = vector.load %arg5[%c0_86, %c3, %c0_87, %c0_88] : memref<1x4x32x32xf32, #tpu.memory_space<vmem>>, vector<1x1x32x32xf32>
    %271 = vector.shape_cast %270 : vector<1x1x32x32xf32> to vector<1x32x32xf32>
    %272 = vector.shape_cast %269 : vector<1x32x32xf32> to vector<1x1x32x32xf32>
    tpu.vector_store %arg5[%c0_86, %c3, %c0_87, %c0_88], %272 {strides = array<i32>} : memref<1x4x32x32xf32, #tpu.memory_space<vmem>>, vector<1x1x32x32xf32>,
    return
  }
  func.func @transform_0(%arg0: i32) -> (i32, i32, i32, i32) {
    %c0_i32 = arith.constant 0 : i32
    %c0_i32_0 = arith.constant 0 : i32
    %c0_i32_1 = arith.constant 0 : i32
    %c0_i32_2 = arith.constant 0 : i32
    return %arg0, %c0_i32, %c0_i32_0, %c0_i32_1 : i32, i32, i32, i32
  }
  func.func @transform_1(%arg0: i32) -> (i32, i32, i32, i32) {
    %c0_i32 = arith.constant 0 : i32
    %c0_i32_0 = arith.constant 0 : i32
    %c0_i32_1 = arith.constant 0 : i32
    %c0_i32_2 = arith.constant 0 : i32
    return %arg0, %c0_i32, %c0_i32_0, %c0_i32_1 : i32, i32, i32, i32
  }
  func.func @transform_2(%arg0: i32) -> (i32, i32) {
    %c0_i32 = arith.constant 0 : i32
    %c0_i32_0 = arith.constant 0 : i32
    %c0_i32_1 = arith.constant 0 : i32
    return %c0_i32, %c0_i32_0 : i32, i32
  }
  func.func @transform_3(%arg0: i32) -> (i32, i32) {
    %c0_i32 = arith.constant 0 : i32
    %c0_i32_0 = arith.constant 0 : i32
    %c0_i32_1 = arith.constant 0 : i32
    return %c0_i32, %c0_i32_0 : i32, i32
  }
  func.func @transform_4(%arg0: i32) -> (i32, i32, i32, i32) {
    %c0_i32 = arith.constant 0 : i32
    %c0_i32_0 = arith.constant 0 : i32
    %c0_i32_1 = arith.constant 0 : i32
    %c0_i32_2 = arith.constant 0 : i32
    return %arg0, %c0_i32, %c0_i32_0, %c0_i32_1 : i32, i32, i32, i32
  }
}

</mosaic_0001>

<bundles_post_ra>
// kernel: tpu_custom_call.1
= control target key start
LH: loop header
LB: loop body
LE: loop exit
PB: predicated region body
PF: predicated region fallthrough
CT: control target
= control target key end

     0   :  { %9 = vsyncpa [#allocation3], 0  ;;  %s2550_s0 = inlined_call_operand.hbm [shape: f32[2,4,16,16], index: 0, kind: input, shape index: {}]   ;;  %s2551_s1 = inlined_call_operand.hbm [shape: f32[2,4,32,32], index: 1, kind: input, shape index: {}]   ;;  %s2552_s2 = inlined_call_operand.vmem [shape: f32[32,16], index: 2, kind: input, shape index: {}]   ;;  %s2553_s3 = inlined_call_operand.vmem [shape: f32[16,32], index: 3, kind: input, shape index: {}]   ;;  %s2554_s4 = inlined_call_operand.hbm [shape: f32[2,4,32,32], index: 4, kind: output, shape index: {}]  }
   0x1   :  { %11 = vsyncpa [#allocation3 + $0x1], 0 }
   0x2   :  { %12 = vsyncpa [#allocation6], 0 }
   0x3   :  { %14 = vsyncpa [#allocation6 + $0x1], 0 }
   0x4   :  { %15 = vsyncpa [#allocation4], 0 }
   0x5   :  { %17 = vsyncpa [#allocation4 + $0x1], 0  ;;  %s2009_s15 = smov 0   ;;  %s2011_s16 = smov 0  }
   0x6   :  { %s2013_s17 = smov 0   ;;  %s2015_s18 = smov 0  }
   0x7 LB: > { %s2030_s19 = sadd.s32 4294967295, %s1975_s18   ;;  %s1517_s20 = sadd.s32 4294967294, %s1975_s18   ;;  %s1975_s18 = sphi %s2015_s18, %s2570_s18   ;;  %s1971_s17 = sphi %s2013_s17, %s2569_s17   ;;  %s1967_s16 = sphi %s2011_s16, %s2568_s16   ;;  %s1963_s15 = sphi %s2009_s15, %s2567_s15  }
   0x8   : > { %s2034_s21 = sadd.s32 1, %s1975_s18   ;;  %s30_s22 = sadd.s32 1, %s1971_s17 }
   0x9   : > { %s27_s23 = ssub.s32 %s1975_s18, %s2034_s21  ;;  %p37_p0 = scmp.ne.s32.totalorder %s1971_s17, %s1967_s16 }
   0xa   : > { %p28_p1 = scmp.eq.s32.totalorder %s27_s23, 0  ;;  %p38_p2 = scmp.eq.s32.totalorder %s1975_s18, 0 }
   0xb   : > { %p43_p3 = scmp.ne.s32.totalorder %s1967_s16, %s1963_s15  ;;  %p44_p4 = scmp.eq.s32.totalorder %s2030_s19, 0 }
   0xc   : > { %s2046_s24 = scalar_select %p28_p1, %s1971_s17, %s30_s22  }
   0xd   : > { %p2048_p5 = por %p38_p2, %p37_p0  ;;  %p2052_p6 = por %p44_p4, %p43_p3 }
   0xe   : > { %p135_p7 = scmp.eq.s32.totalorder %s2030_s19, 1  ;;  %p141_p8 = scmp.eq.s32.totalorder %s1517_s20, 1 }
   0xf   : > { %s2558_s26 = scalar_select %p2052_p6, 1, 0 }
  0x10   : > { %p1759_p10 = scmp.lt.s32.totalorder %s1975_s18, 2  ;;  %p2059_p11 = por %p135_p7, %p37_p0 }
  0x11   : > { %p2063_p12 = por %p141_p8, %p43_p3  ;;  %s2068_s29 = sand.u32 1, %s1971_s17  }
  0x12   : > { %s2559_s27 = scalar_select %p2059_p11, 1, 0 }
  0x13   : > { %s2560_s28 = scalar_select %p2063_p12, 1, 0 }
  0x14   : > { %s1579_s30 = sshll.u32 %s1975_s18, 10  ;;  %s1520_s5 = sshll.u32 %s2068_s29, 6 }
  0x15   : > { %s2075_s8 = scalar_lea.hbm %s2550_s0, %s1579_s30  ;;  %s171_s9 = scalar_lea.vmem [#allocation2], %s1520_s5 }
  0x16   : > { %s178_s10 = sshll.u32 %s171_s9, 4  ;;  %p2079_p13 = pnand %p1759_p10, %p2048_p5  ;;  %s2083_s10 = int_to_ptr.vmem [resolvable:$true] %s178_s10 }
  0x17   : > { %s168_s12 = scalar_lea.sflag [#allocation3], %s2068_s29  ;;  %s1845_s13 = scalar_lea.hbm %s2075_s8, 1024 }
  0x18   : > { %p1846_p0 = scmp.ne.s32.totalorder %s2075_s8, %s1845_s13  ;;  %p1847_p1 = pneg %p2079_p13 }
  0x19   : > { %s1850_s22 = scalar_lea.hbm %s2550_s0, 2048  ;;  %p1851_p4 = scmp.lt.u32.totalorder %s2075_s8, %s2550_s0 }
  0x1a   : > { %p1848_p2 = pnand %p1847_p1, %p1846_p0  ;;  %p1852_p5 = scmp.lt.u32.totalorder %s1850_s22, %s1845_s13 }
  0x1b   : > { %p1854_p8 = scmp.lt.u32.totalorder %s1845_s13, %s2075_s8 }
  0x1c   : > { %p1849_p3 = pneg %p1848_p2  ;;  %p1853_p7 = por %p1852_p5, %p1851_p4 }
  0x1e   : > { %p1855_p10 = por %p1854_p8, %p1853_p7 }
  0x20   : > { %p1856_p9 = pnand %p1855_p10, %p1849_p3 }
  0x22   : > { %1859 = shalt.err (!%p1856_p9)
}
  0x23   : > { %s1860_s30 = scalar_lea.vmem %s2083_s10, 1024  ;;  %s1977_s5 = smov [#allocation2]  }
  0x24   : > { %p1861_p0 = scmp.ne.s32.totalorder %s2083_s10, %s1860_s30  ;;  %s1865_s6 = sshll.u32 %s1977_s5, 4  ;;  %s1866_s6 = int_to_ptr.vmem [resolvable:$false] %s1865_s6 }
  0x25   : > { %s1867_s7 = scalar_lea.vmem %s1866_s6, 2048  ;;  %p1868_p11 = scmp.lt.s32.totalorder %s2083_s10, %s1866_s6 }
  0x26   : > { %p1863_p2 = pnand %p1861_p0, %p1847_p1  ;;  %p1869_p4 = scmp.lt.s32.totalorder %s1867_s7, %s1860_s30 }
  0x28   : > { %p1864_p12 = pneg %p1863_p2  ;;  %p1870_p5 = por %p1869_p4, %p1868_p11 }
  0x2a   : > { %p1871_p7 = pnand %p1870_p5, %p1864_p12 }
  0x2c   : > { %1874 = shalt.err (!%p1871_p7)
}
  0x2d   : > { %s1978_s9 = smov 128   ;;  %s1979_s13 = smov 8  }
  0x2e   : > { %1751 = dma.hbm_to_vmem [thread:$0]  (!%p2079_p13), %s2075_s8, 1024, %s2083_s10, %s168_s12, %s1978_s9, %s1978_s9, %s1979_s13  }
  0x2f   : > { %p1526_p9 = scmp.ge.s32.totalorder %s1975_s18, 1  ;;  %p207_p11 = scmp.lt.s32.totalorder %s1975_s18, 3 }
  0x30   : > { %s1523_s14 = sshll.u32 %s2068_s29, 7  ;;  %s1580_s22 = sshll.u32 %s1975_s18, 11 }
  0x31   : > { %p2119_p12 = pnand %p1526_p9, %p207_p11  ;;  %s192_s23 = scalar_lea.vmem [#allocation5], %s1523_s14 }
  0x32   : > { %s199_s25 = sshll.u32 %s192_s23, 4  ;;  %s2127_s6 = scalar_lea.hbm %s2551_s1, %s1580_s22  ;;  %s2129_s25 = int_to_ptr.vmem [resolvable:$true] %s199_s25 }
  0x33   : > { %s189_s8 = scalar_lea.sflag [#allocation6], %s2068_s29  ;;  %s1875_s10 = scalar_lea.hbm %s2127_s6, 2048 }
  0x34   : > { %p1876_p3 = scmp.ne.s32.totalorder %s2127_s6, %s1875_s10  ;;  %s1880_s14 = scalar_lea.hbm %s2551_s1, 4096 }
  0x35   : > { %p1881_p0 = scmp.lt.u32.totalorder %s2127_s6, %s2551_s1  ;;  %p1882_p2 = scmp.lt.u32.totalorder %s1880_s14, %s1875_s10 }
  0x36   : > { %p1878_p8 = pnand %p1876_p3, %p1847_p1  ;;  %p1884_p5 = scmp.lt.u32.totalorder %s1875_s10, %s2127_s6 }
  0x37   : > { %p1883_p4 = por %p1882_p2, %p1881_p0 }
  0x38   : > { %p1879_p10 = pneg %p1878_p8 }
  0x39   : > { %p1885_p7 = por %p1884_p5, %p1883_p4 }
  0x3b   : > { %p1886_p9 = pnand %p1885_p7, %p1879_p10 }
  0x3d   : > { %1889 = shalt.err (!%p1886_p9)
}
  0x3e   : > { %s1890_s30 = scalar_lea.vmem %s2129_s25, 2048  ;;  %s1980_s5 = smov [#allocation5]  }
  0x3f   : > { %p1891_p11 = scmp.ne.s32.totalorder %s2129_s25, %s1890_s30  ;;  %s1895_s12 = sshll.u32 %s1980_s5, 4  ;;  %s1896_s12 = int_to_ptr.vmem [resolvable:$false] %s1895_s12 }
  0x40   : > { %s1897_s7 = scalar_lea.vmem %s1896_s12, 4096  ;;  %p1898_p6 = scmp.lt.s32.totalorder %s2129_s25, %s1896_s12 }
  0x41   : > { %p1893_p3 = pnand %p1891_p11, %p1847_p1  ;;  %p1899_p0 = scmp.lt.s32.totalorder %s1897_s7, %s1890_s30 }
  0x43   : > { %p1894_p8 = pneg %p1893_p3  ;;  %p1900_p2 = por %p1899_p0, %p1898_p6 }
  0x45   : > { %p1901_p4 = pnand %p1900_p2, %p1894_p8 }
  0x47   : > { %1904 = shalt.err (!%p1901_p4)
}
  0x48   : > { %1754 = dma.hbm_to_vmem [thread:$0]  (!%p2079_p13), %s2127_s6, 2048, %s2129_s25, %s189_s8, %s1978_s9, %s1978_s9, %s1979_s13  }
  0x49   : > { %211 = sbr.rel (%p2119_p12) target bundleno = 650 (0x28a), region = 36  ;;  %s2163_s10 = sand.u32 (!%p2119_p12), 1, %s1967_s16  }
  0x4a   : > { %s1527_s14 = sshll.u32 (!%p2119_p12), %s2163_s10, 6  ;;  %s214_s23 = scalar_lea.sflag (!%p2119_p12), [#allocation3], %s2163_s10 }
  0x4b   : > { %s217_s11 = scalar_lea.vmem (!%p2119_p12), [#allocation2], %s1527_s14  ;;  %p2563_p6 = scmp.ne.s32.totalorder (!%p2119_p12), %s2558_s26, 0 }
  0x50   : > { %1950 = dma.done.wait (%p2563_p6), %s214_s23, 1024  }
  0x51   : > { %1952 = vsyncadd (%p2563_p6), %s214_s23, 4294966272  ;;  %s1528_s29 = sshll.u32 %s2163_s10, 7  ;;  %s223_s9 = scalar_lea.sflag [#allocation6], %s2163_s10 }
  0x52   : > { %s2175_s13 = scalar_lea.vmem [#allocation5], %s1528_s29 }
  0x53   : > { %1954 = dma.done.wait (%p2563_p6), %s223_s9, 2048  }
  0x54   : > { %1956 = vsyncadd (%p2563_p6), %s223_s9, 4294965248  ;;  %v256_v0 = vld [vmem:[%s217_s11] sm:$0xff]  ;;  %v257_v1 = vld [vmem:[%s217_s11 + $0x8] sm:$0xff]  ;;  %vm420_vm0 = vcmask 130048   ;;  %vm1223_vm1 = vcmask 261120   ;;  %p2564_p1 = scmp.ne.s32.totalorder %s2559_s27, 0 }
  0x55   : > { %v2181_v2 = vld [vmem:[%s217_s11 + $0x10] sm:$0xff]  ;;  %v2183_v3 = vld [vmem:[%s217_s11 + $0x18] sm:$0xff]  ;;  %v2185_v4 = vld [vmem:[%s217_s11 + $0x20] sm:$0xff]  ;;  %v280_v6 = vmul.f32 0.8100427, %v256_v0  ;;  %s1981_s6 = smov [#allocation7]  }
  0x56   : > { %v2187_v5 = vld [vmem:[%s217_s11 + $0x28] sm:$0xff]  ;;  %v2189_v7 = vld [vmem:[%s217_s11 + $0x30] sm:$0xff]  ;;  %v2191_v8 = vld [vmem:[%s217_s11 + $0x38] sm:$0xff]  ;;  %v281_v9 = vmul.f32 0.8100427, %v257_v1  ;;  %s2431_s11 = scalar_lea.vmem [#allocation7], %s1528_s29 }
  0x57   : > { %v282_v10 = vmul.f32 0.8471641, %v2181_v2  ;;  %v283_v11 = vmul.f32 0.8471641, %v2183_v3  ;;  %v286_v12 = vmul.f32 -0.25608888, %v2185_v4 }
  0x58   : > { %v287_v13 = vmul.f32 -0.25608888, %v2187_v5  ;;  %v290_v15 = vmul.f32 -0.4825894, %v2189_v7  ;;  %v291_v16 = vmul.f32 -0.4825894, %v2191_v8 }
  0x59   : > { %v284_v14 = vadd.f32 %v282_v10, %v280_v6  ;;  %v314_v17 = vmul.f32 0.21723825, %v256_v0  ;;  %v285_v18 = vadd.f32 %v283_v11, %v281_v9  ;;  %v315_v19 = vmul.f32 0.21723825, %v257_v1  ;;  %v2208_v30 = vld [vmem:[%s2552_s2] sm:$0xff]  ;;  %s1581_s29 = sshll.u32 %s2030_s19, 11 }
  0x5a   : > { %v316_v20 = vmul.f32 0.01077187, %v2181_v2  ;;  %v317_v21 = vmul.f32 0.01077187, %v2183_v3  ;;  %v320_v23 = vmul.f32 0.32765025, %v2185_v4  ;;  %1634 = vmatprep.mubr.msk.f32.mxu0 %vm420_vm0, %v2208_v30  ;;  %1644 = vmatprep.mubr.msk.f32.mxu1 %vm420_vm0, %v2208_v30  ;;  %s2500_s20 = scalar_lea.hbm %s2554_s4, %s1581_s29 }
  0x5b   : > { %v288_v22 = vadd.f32 %v286_v12, %v284_v14  ;;  %v321_v24 = vmul.f32 0.32765025, %v2187_v5  ;;  %v324_v25 = vmul.f32 -0.42956963, %v2189_v7  ;;  %v289_v26 = vadd.f32 %v287_v13, %v285_v18  ;;  %s1421_s9 = sshll.u32 %s2431_s11, 4  ;;  %s1408_s19 = scalar_lea.sflag [#allocation4], %s2163_s10  ;;  %s2502_s9 = int_to_ptr.vmem [resolvable:$true] %s1421_s9 }
  0x5c   : > { %v318_v27 = vadd.f32 %v316_v20, %v314_v17  ;;  %v319_v28 = vadd.f32 %v317_v21, %v315_v19  ;;  %v325_v29 = vmul.f32 -0.42956963, %v2191_v8  ;;  %v348_v32 = vmul.f32 0.117793135, %v256_v0  ;;  %s1905_s25 = scalar_lea.vmem %s2502_s9, 2048  ;;  %s1909_s8 = sshll.u32 %s1981_s6, 4  ;;  %s1910_s8 = int_to_ptr.vmem [resolvable:$false] %s1909_s8 }
  0x5d   : > { %v292_v31 = vadd.f32 %v290_v15, %v288_v22  ;;  %v349_v33 = vmul.f32 0.117793135, %v257_v1  ;;  %v350_v34 = vmul.f32 -0.7622077, %v2181_v2  ;;  %v293_v35 = vadd.f32 %v291_v16, %v289_v26  ;;  %p1906_p13 = scmp.ne.s32.totalorder %s2502_s9, %s1905_s25  ;;  %s1911_s22 = scalar_lea.vmem %s1910_s8, 4096 }
  0x5e   : > { %v322_v36 = vadd.f32 %v320_v23, %v318_v27  ;;  %v323_v37 = vadd.f32 %v321_v24, %v319_v28  ;;  %v351_v38 = vmul.f32 -0.7622077, %v2183_v3  ;;  %v354_v41 = vmul.f32 -0.46792522, %v2185_v4  ;;  %p1912_p5 = scmp.lt.s32.totalorder %s2502_s9, %s1910_s8  ;;  %p1913_p7 = scmp.lt.s32.totalorder %s1911_s22, %s1905_s25 }
  0x5f   : > { %v2216_v39 = vadd.f32 -0.039136387, %v292_v31  ;;  %v352_v40 = vadd.f32 %v350_v34, %v348_v32  ;;  %v355_v42 = vmul.f32 -0.46792522, %v2187_v5  ;;  %v2220_v43 = vadd.f32 -0.039136387, %v293_v35  ;;  %p1907_p12 = pnand %p1906_p13, %p2564_p1 }
  0x60   : > { %v326_v44 = vadd.f32 %v324_v25, %v322_v36  ;;  %v327_v45 = vadd.f32 %v325_v29, %v323_v37  ;;  %v353_v46 = vadd.f32 %v351_v38, %v349_v33  ;;  %v358_v49 = vmul.f32 0.90385497, %v2189_v7  ;;  %p1914_p9 = por %p1913_p7, %p1912_p5 }
  0x61   : > { %v296_v47 = vmul.f32 %v2216_v39, %v2216_v39  ;;  %v356_v48 = vadd.f32 %v354_v41, %v352_v40  ;;  %v359_v50 = vmul.f32 0.90385497, %v2191_v8  ;;  %v297_v51 = vmul.f32 %v2220_v43, %v2220_v43  ;;  %p1908_p10 = pneg %p1907_p12 }
  0x62   : > { %v2228_v52 = vadd.f32 0.11023386, %v326_v44  ;;  %v2230_v53 = vadd.f32 0.11023386, %v327_v45  ;;  %v357_v54 = vadd.f32 %v355_v42, %v353_v46  ;;  %v382_v57 = vmul.f32 -0.6537708, %v256_v0 }
  0x63   : > { %v298_v55 = vmul.f32 %v296_v47, %v2216_v39  ;;  %v360_v56 = vadd.f32 %v358_v49, %v356_v48  ;;  %v383_v58 = vmul.f32 -0.6537708, %v257_v1  ;;  %v299_v59 = vmul.f32 %v297_v51, %v2220_v43  ;;  %p1915_p11 = pnand %p1914_p9, %p1908_p10 }
  0x64   : > { %v330_v60 = vmul.f32 %v2228_v52, %v2228_v52  ;;  %v331_v61 = vmul.f32 %v2230_v53, %v2230_v53  ;;  %v361_v62 = vadd.f32 %v359_v50, %v357_v54  ;;  %v384_v9 = vmul.f32 -0.2938367, %v2181_v2 }
  0x65   : > { %v300_v63 = vmul.f32 0.044715, %v298_v55  ;;  %v2238_v6 = vadd.f32 0.10823655, %v360_v56  ;;  %v301_v10 = vmul.f32 0.044715, %v299_v59 }
  0x66   : > { %v332_v11 = vmul.f32 %v330_v60, %v2228_v52  ;;  %v333_v0 = vmul.f32 %v331_v61, %v2230_v53  ;;  %v2243_v1 = vadd.f32 0.10823655, %v361_v62  ;;  %v385_v14 = vmul.f32 -0.2938367, %v2183_v3 }
  0x67   : > { %v302_v12 = vadd.f32 %v300_v63, %v2216_v39  ;;  %v364_v13 = vmul.f32 %v2238_v6, %v2238_v6  ;;  %v386_v15 = vadd.f32 %v384_v9, %v382_v57  ;;  %v303_v16 = vadd.f32 %v301_v10, %v2220_v43 }
  0x68   : > { %v334_v17 = vmul.f32 0.044715, %v332_v11  ;;  %v335_v18 = vmul.f32 0.044715, %v333_v0  ;;  %v365_v2 = vmul.f32 %v2243_v1, %v2243_v1  ;;  %v387_v21 = vadd.f32 %v385_v14, %v383_v58 }
  0x69   : > { %v304_v19 = vmul.f32 0.7978846, %v302_v12  ;;  %v366_v20 = vmul.f32 %v364_v13, %v2238_v6  ;;  %v388_v22 = vmul.f32 0.55538154, %v2185_v4  ;;  %v305_v23 = vmul.f32 0.7978846, %v303_v16 }
  0x6a   : > { %v336_v24 = vadd.f32 %v334_v17, %v2228_v52  ;;  %v337_v25 = vadd.f32 %v335_v18, %v2230_v53  ;;  %v367_v3 = vmul.f32 %v365_v2, %v2243_v1  ;;  %v389_v27 = vmul.f32 0.55538154, %v2187_v5 }
  0x6b   : > { %1797 = vtanh.f32 %v304_v19  ;;  %v368_v26 = vmul.f32 0.044715, %v366_v20  ;;  %v390_v28 = vadd.f32 %v388_v22, %v386_v15  ;;  %v392_v4 = vmul.f32 0.81727785, %v2189_v7  ;;  %v774_v22 = vld [vmem:[%s2553_s3 + $0x8] sm:$0xff] }
  0x6c   : > { %1799 = vtanh.f32 %v305_v23  ;;  %v338_v29 = vmul.f32 0.7978846, %v336_v24  ;;  %v339_v31 = vmul.f32 0.7978846, %v337_v25  ;;  %v369_v32 = vmul.f32 0.044715, %v367_v3 }
  0x6d   : > { %v370_v33 = vadd.f32 %v368_v26, %v2238_v6  ;;  %v391_v34 = vadd.f32 %v389_v27, %v387_v21  ;;  %v393_v35 = vmul.f32 0.81727785, %v2191_v8  ;;  %v394_v38 = vadd.f32 %v392_v4, %v390_v28 }
  0x6e   : > { %1801 = vtanh.f32 %v338_v29  ;;  %v371_v36 = vadd.f32 %v369_v32, %v2243_v1 }
  0x6f   : > { %1803 = vtanh.f32 %v339_v31  ;;  %v372_v37 = vmul.f32 0.7978846, %v370_v33  ;;  %v395_v40 = vadd.f32 %v393_v35, %v391_v34  ;;  %v2262_v41 = vadd.f32 0.08724095, %v394_v38 }
  0x70   : > { %v373_v5 = vmul.f32 0.7978846, %v371_v36 }
  0x71   : > { %1805 = vtanh.f32 %v372_v37  ;;  %v2264_v42 = vadd.f32 0.08724095, %v395_v40  ;;  %v398_v44 = vmul.f32 %v2262_v41, %v2262_v41 }
  0x72   : > { %1807 = vtanh.f32 %v373_v5 }
  0x73   : > { %v399_v7 = vmul.f32 %v2264_v42, %v2264_v42  ;;  %v400_v45 = vmul.f32 %v398_v44, %v2262_v41 }
  0x75   : > { %v1798_v8 = vpop.eup %1797  ;;  %v401_v46 = vmul.f32 %v399_v7, %v2264_v42  ;;  %v402_v50 = vmul.f32 0.044715, %v400_v45 }
  0x76   : > { %v1800_v47 = vpop.eup %1799  ;;  %v308_v48 = vadd.f32 1.0, %v1798_v8 }
  0x77   : > { %v309_v49 = vadd.f32 1.0, %v1800_v47  ;;  %v403_v51 = vmul.f32 0.044715, %v401_v46  ;;  %v404_v59 = vadd.f32 %v402_v50, %v2262_v41  ;;  %v265_v46 = vld [vmem:[%s2175_s13 + $0x8] sm:$0xff]  ;;  %v264_v47 = vld [vmem:[%s2175_s13] sm:$0xff] }
  0x78   : > { %v1802_v54 = vpop.eup %1801  ;;  %v310_v55 = vmul.f32 0.5, %v308_v48  ;;  %v269_v50 = vld [vmem:[%s2175_s13 + $0x28] sm:$0xff] }
  0x79   : > { %v1804_v56 = vpop.eup %1803  ;;  %v311_v57 = vmul.f32 0.5, %v309_v49  ;;  %v342_v58 = vadd.f32 1.0, %v1802_v54  ;;  %v405_v60 = vadd.f32 %v403_v51, %v2264_v42  ;;  %v406_v11 = vmul.f32 0.7978846, %v404_v59 }
  0x7a   : > { %v312_v61 = vmul.f32 %v310_v55, %v2216_v39  ;;  %v343_v62 = vadd.f32 1.0, %v1804_v56  ;;  %v268_v56 = vld [vmem:[%s2175_s13 + $0x20] sm:$0xff] }
  0x7b   : > { %v1806_v63 = vpop.eup %1805  ;;  %v313_v9 = vmul.f32 %v311_v57, %v2220_v43  ;;  %v344_v10 = vmul.f32 0.5, %v342_v58  ;;  %v407_v0 = vmul.f32 0.7978846, %v405_v60  ;;  %1809 = vtanh.f32 %v406_v11  ;;  %v417_v43 = vld [vmem:[%s2552_s2 + $0x8] sm:$0xff]  ;;  %v267_v57 = vld [vmem:[%s2175_s13 + $0x18] sm:$0xff] }
  0x7c   : > { %v1808_v12 = vpop.eup %1807  ;;  %v345_v13 = vmul.f32 0.5, %v343_v62  ;;  %v376_v14 = vadd.f32 1.0, %v1806_v63 }
  0x7d   : > { %v1710_v15 = vpack.c.bf16 %v313_v9, %v312_v61  ;;  %v346_v16 = vmul.f32 %v344_v10, %v2228_v52  ;;  %v377_v17 = vadd.f32 1.0, %v1808_v12  ;;  %1811 = vtanh.f32 %v407_v0  ;;  %v418_v52 = vld [vmem:[%s2552_s2 + $0x10] sm:$0xff] }
  0x7e   : > { %v347_v18 = vmul.f32 %v345_v13, %v2230_v53  ;;  %v378_v2 = vmul.f32 0.5, %v376_v14  ;;  %v773_v53 = vld [vmem:[%s2553_s3] sm:$0xff]  ;;  %v266_v61 = vld [vmem:[%s2175_s13 + $0x10] sm:$0xff] }
  0x7f   : > { %1711 = vmatprep.subr.bf16.mxu0 %v1710_v15  ;;  %v379_v39 = vmul.f32 0.5, %v377_v17 }
  0x80   : > { %v1714_v19 = vpack.c.bf16 %v347_v18, %v346_v16  ;;  %1713 = vmatpush3.bf16.msra.mxu0 %v1710_v15  ;;  %v380_v20 = vmul.f32 %v378_v2, %v2238_v6  ;;  %v419_v6 = vld [vmem:[%s2552_s2 + $0x18] sm:$0xff] }
  0x81   : > { %v381_v21 = vmul.f32 %v379_v39, %v2243_v1  ;;  %v1726_v1 = vpack.c.bf16 %v774_v22, %v773_v53  ;;  %v271_v15 = vld [vmem:[%s2175_s13 + $0x38] sm:$0xff] }
  0x82   : > { %1715 = vmatprep.subr.bf16.mxu1 %v1714_v19 }
  0x83   : > { %1717 = vmatpush3.bf16.msra.mxu1 %v1714_v19  ;;  %1635 = vmatmul.mubr.msk.f32.vlgmr.msra.gmra.mrb[0].mxu0 %vm420_vm0, %v417_v43  ;;  %v1718_v23 = vpack.c.bf16 %v381_v21, %v380_v20  ;;  %v270_v19 = vld [vmem:[%s2175_s13 + $0x30] sm:$0xff] }
  0x84   : > { %1637 = vmatprep.mubr.msk.f32.mxu0 %vm420_vm0, %v418_v52 }
  0x85   : > { %1719 = vmatprep.subr.bf16.mxu0 %v1718_v23  ;;  %v1810_v24 = vpop.eup %1809 }
  0x86   : > { %1645 = vmatmul.mubr.msk.f32.vlgmr.msra.gmra.mrb[0].mxu1 %vm420_vm0, %v417_v43  ;;  %1721 = vmatpush3.bf16.msra.mxu0 %v1718_v23  ;;  %v410_v3 = vadd.f32 1.0, %v1810_v24 }
  0x87   : > { %1647 = vmatprep.mubr.msk.f32.mxu1 %vm420_vm0, %v418_v52  ;;  %1638 = vmatmul.mubr.msk.f32.gmra.mrb[2].mxu0 %vm420_vm0, %v419_v6  ;;  %v1812_v25 = vpop.eup %1811 }
  0x88   : > { %1654 = vmatprep.mubr.msk.f32.mxu0 %vm420_vm0, %v2208_v30  ;;  %1727 = vmatprep.subr.bf16.mxu0 %v1726_v1  ;;  %v411_v26 = vadd.f32 1.0, %v1812_v25  ;;  %v412_v27 = vmul.f32 0.5, %v410_v3 }
  0x8a   : > { %1648 = vmatmul.mubr.msk.f32.gmra.mrb[2].mxu1 %vm420_vm0, %v419_v6  ;;  %v413_v28 = vmul.f32 0.5, %v411_v26  ;;  %v414_v29 = vmul.f32 %v412_v27, %v2262_v41 }
  0x8b   : > { %1664 = vmatprep.mubr.msk.f32.mxu1 %vm420_vm0, %v2208_v30  ;;  %1655 = vmatmul.mubr.msk.f32.vlgmr.msra.gmra.mrb[4].mxu0 %vm420_vm0, %v417_v43 }
  0x8c   : > { %1657 = vmatprep.mubr.msk.f32.mxu0 %vm420_vm0, %v418_v52  ;;  %1729 = vmatpush3.bf16.msra.mxu0 %v1726_v1  ;;  %v415_v31 = vmul.f32 %v413_v28, %v2264_v42 }
  0x8d   : > { %1735 = vmatprep.subr.bf16.mxu0 %v1726_v1 }
  0x8e   : > { %v1722_v32 = vpack.c.bf16 %v415_v31, %v414_v29 }
  0x8f   : > { %1658 = vmatmul.mubr.msk.f32.gmra.mrb[6].mxu0 %vm420_vm0, %v419_v6 }
  0x90   : > { %1723 = vmatprep.subr.bf16.mxu1 %v1722_v32 }
  0x91   : > { %1725 = vmatpush3.bf16.msra.mxu1 %v1722_v32 }
  0x92   : > { %1731 = vmatprep.subr.bf16.mxu1 %v1726_v1 }
  0x94   : > { %1665 = vmatmul.mubr.msk.f32.vlgmr.msra.gmra.mrb[4].mxu1 %vm420_vm0, %v417_v43 }
  0x95   : > { %1667 = vmatprep.mubr.msk.f32.mxu1 %vm420_vm0, %v418_v52  ;;  %1733 = vmatpush3.bf16.msra.mxu1 %v1726_v1 }
  0x96   : > { %1739 = vmatprep.subr.bf16.mxu1 %v1726_v1 }
  0x98   : > { %1668 = vmatmul.mubr.msk.f32.gmra.mrb[6].mxu1 %vm420_vm0, %v419_v6 }
 0x156   : > { %v1636_v30 = vpop.f32.mrb[0].mxu0 }
 0x157   : > { %v499_v33 = vpop.f32.mrb[1].mxu0 }
 0x158   : > { %1674 = vmatprep.mubr.msk.f32.mxu0 %vm420_vm0, %v499_v33 }
 0x159   : > { %v1646_v34 = vpop.f32.mrb[0].mxu1  ;;  %1675 = vmatmul.mubr.msk.f32.vlgmr.msra.gmra.mrb[8].mxu0 %vm420_vm0, %v1636_v30 }
 0x15a   : > { %v584_v4 = vpop.f32.mrb[1].mxu1  ;;  %v1639_v35 = vpop.f32.mrb[2].mxu0  ;;  %1737 = vmatpush3.bf16.msra.mxu0 %v1726_v1 }
 0x15b   : > { %1684 = vmatprep.mubr.msk.f32.mxu1 %vm420_vm0, %v584_v4  ;;  %v509_v36 = vpop.f32.mrb[3].mxu0 }
 0x15c   : > { %1685 = vmatmul.mubr.msk.f32.vlgmr.msra.gmra.mrb[8].mxu1 %vm420_vm0, %v1646_v34  ;;  %1677 = vmatprep.mubr.msk.f32.mxu0 %vm420_vm0, %v509_v36 }
 0x15d   : > { %v1649_v37 = vpop.f32.mrb[2].mxu1  ;;  %1741 = vmatpush3.bf16.msra.mxu1 %v1726_v1  ;;  %1678 = vmatmul.mubr.msk.f32.gmra.mrb[10].mxu0 %vm420_vm0, %v1639_v35 }
 0x15e   : > { %v594_v38 = vpop.f32.mrb[3].mxu1  ;;  %v1656_v40 = vpop.f32.mrb[4].mxu0 }
 0x15f   : > { %1687 = vmatprep.mubr.msk.f32.mxu1 %vm420_vm0, %v594_v38  ;;  %v669_v5 = vpop.f32.mrb[5].mxu0 }
 0x160   : > { %1688 = vmatmul.mubr.msk.f32.gmra.mrb[10].mxu1 %vm420_vm0, %v1649_v37  ;;  %1694 = vmatprep.mubr.msk.f32.mxu0 %vm420_vm0, %v669_v5 }
 0x161   : > { %1695 = vmatmul.mubr.msk.f32.vlgmr.msra.gmra.mrb[12].mxu0 %vm420_vm0, %v1656_v40 }
 0x162   : > { %v1659_v41 = vpop.f32.mrb[6].mxu0 }
 0x163   : > { %v679_v42 = vpop.f32.mrb[7].mxu0 }
 0x164   : > { %1697 = vmatprep.mubr.msk.f32.mxu0 %vm420_vm0, %v679_v42 }
 0x165   : > { %1698 = vmatmul.mubr.msk.f32.gmra.mrb[14].mxu0 %vm420_vm0, %v1659_v41 }
 0x167   : > { %v1666_v44 = vpop.f32.mrb[4].mxu1 }
 0x168   : > { %v754_v7 = vpop.f32.mrb[5].mxu1 }
 0x169   : > { %1704 = vmatprep.mubr.msk.f32.mxu1 %vm420_vm0, %v754_v7 }
 0x16a   : > { %1705 = vmatmul.mubr.msk.f32.vlgmr.msra.gmra.mrb[12].mxu1 %vm420_vm0, %v1666_v44 }
 0x16b   : > { %v1669_v8 = vpop.f32.mrb[6].mxu1 }
 0x16c   : > { %v764_v45 = vpop.f32.mrb[7].mxu1 }
 0x16d   : > { %1707 = vmatprep.mubr.msk.f32.mxu1 %vm420_vm0, %v764_v45 }
 0x16e   : > { %1708 = vmatmul.mubr.msk.f32.gmra.mrb[14].mxu1 %vm420_vm0, %v1669_v8 }
 0x22c   : > { %v1676_v48 = vpop.f32.mrb[8].mxu0 }
 0x22d   : > { %v1164_v49 = vmul.f32 %v1676_v48, %v265_v46  ;;  %v853_v51 = vpop.f32.mrb[9].mxu0  ;;  %v1294_v54 = vmul.f32 -2.488384, %v1676_v48 }
 0x22e   : > { %v1163_v55 = vmul.f32 %v853_v51, %v264_v47  ;;  %v1293_v60 = vmul.f32 -2.488384, %v853_v51 }
 0x22f   : > { %v1172_v58 = vmul.f32 -0.56841135, %v1164_v49  ;;  %v1686_v59 = vpop.f32.mrb[8].mxu1 }
 0x230   : > { %v1168_v62 = vmul.f32 %v1686_v59, %v269_v50  ;;  %v1298_v63 = vmul.f32 0.9422034, %v1686_v59  ;;  %v1171_v9 = vmul.f32 -0.56841135, %v1163_v55  ;;  %v950_v10 = vpop.f32.mrb[9].mxu1  ;;  %v1679_v11 = vpop.f32.mrb[10].mxu0 }
 0x231   : > { %v1167_v0 = vmul.f32 %v950_v10, %v268_v56  ;;  %v1297_v12 = vmul.f32 0.9422034, %v950_v10  ;;  %v1166_v13 = vmul.f32 %v1679_v11, %v267_v57  ;;  %v1296_v14 = vmul.f32 -2.488384, %v1679_v11  ;;  %v863_v16 = vpop.f32.mrb[11].mxu0 }
 0x232   : > { %v1176_v17 = vmul.f32 0.5710256, %v1168_v62  ;;  %v1302_v18 = vadd.f32 %v1298_v63, %v1294_v54  ;;  %v1165_v2 = vmul.f32 %v863_v16, %v266_v61  ;;  %v1295_v39 = vmul.f32 -2.488384, %v863_v16  ;;  %v273_v16 = vld [vmem:[%s2175_s13 + $0x48] sm:$0xff] }
 0x233   : > { %v1175_v43 = vmul.f32 0.5710256, %v1167_v0  ;;  %v1301_v20 = vadd.f32 %v1297_v12, %v1293_v60  ;;  %v1174_v21 = vmul.f32 -0.56841135, %v1166_v13  ;;  %v1689_v52 = vpop.f32.mrb[10].mxu1 }
 0x234   : > { %v1180_v53 = vadd.f32 %v1176_v17, %v1172_v58  ;;  %v2337_v22 = vadd.f32 -0.24279797, %v1302_v18  ;;  %v1170_v23 = vmul.f32 %v1689_v52, %v271_v15  ;;  %v1300_v6 = vmul.f32 0.9422034, %v1689_v52  ;;  %v960_v1 = vpop.f32.mrb[11].mxu1  ;;  %v2339_v24 = vpop.f32.mrb[12].mxu0 }
 0x235   : > { %v1179_v25 = vadd.f32 %v1175_v43, %v1171_v9  ;;  %v2341_v3 = vadd.f32 -0.24279797, %v1301_v20  ;;  %v1173_v26 = vmul.f32 -0.56841135, %v1165_v2  ;;  %v1169_v27 = vmul.f32 %v960_v1, %v270_v19  ;;  %v2343_v28 = vpop.f32.mrb[13].mxu0  ;;  %v277_v19 = vld [vmem:[%s2175_s13 + $0x68] sm:$0xff] }
 0x236   : > { %v2345_v29 = vadd.f32 0.024831528, %v1180_v53  ;;  %v1310_v31 = vmul.f32 %v2337_v22, %v2337_v22  ;;  %v1178_v32 = vmul.f32 0.5710256, %v1170_v23  ;;  %v1304_v30 = vadd.f32 %v1300_v6, %v1296_v14  ;;  %v272_v6 = vld [vmem:[%s2175_s13 + $0x40] sm:$0xff] }
 0x237   : > { %v2349_v33 = vadd.f32 0.024831528, %v1179_v25  ;;  %v1309_v34 = vmul.f32 %v2341_v3, %v2341_v3  ;;  %v1177_v4 = vmul.f32 0.5710256, %v1169_v27  ;;  %v1299_v35 = vmul.f32 0.9422034, %v960_v1 }
 0x238   : > { %v1188_v36 = vmul.f32 %v2345_v29, %v2345_v29  ;;  %v1314_v37 = vmul.f32 %v1310_v31, %v2337_v22  ;;  %v1182_v38 = vadd.f32 %v1178_v32, %v1174_v21  ;;  %v2356_v40 = vadd.f32 -0.24279797, %v1304_v30  ;;  %v2358_v5 = vpop.f32.mrb[14].mxu0  ;;  %v276_v31 = vld [vmem:[%s2175_s13 + $0x60] sm:$0xff] }
 0x239   : > { %v1187_v41 = vmul.f32 %v2349_v33, %v2349_v33  ;;  %v1313_v42 = vmul.f32 %v1309_v34, %v2341_v3  ;;  %v1181_v44 = vadd.f32 %v1177_v4, %v1173_v26  ;;  %v1303_v7 = vadd.f32 %v1299_v35, %v1295_v39  ;;  %v2363_v8 = vpop.f32.mrb[15].mxu0  ;;  %v275_v35 = vld [vmem:[%s2175_s13 + $0x58] sm:$0xff] }
 0x23a   : > { %v1192_v45 = vmul.f32 %v1188_v36, %v2345_v29  ;;  %v1318_v46 = vmul.f32 0.044715, %v1314_v37  ;;  %v2366_v47 = vadd.f32 0.024831528, %v1182_v38  ;;  %v1312_v48 = vmul.f32 %v2356_v40, %v2356_v40 }
 0x23b   : > { %v1191_v49 = vmul.f32 %v1187_v41, %v2349_v33  ;;  %v1317_v50 = vmul.f32 0.044715, %v1313_v42  ;;  %v2371_v51 = vadd.f32 0.024831528, %v1181_v44  ;;  %v2373_v54 = vadd.f32 -0.24279797, %v1303_v7 }
 0x23c   : > { %v1196_v55 = vmul.f32 0.044715, %v1192_v45  ;;  %v1322_v56 = vadd.f32 %v1318_v46, %v2337_v22  ;;  %v1190_v57 = vmul.f32 %v2366_v47, %v2366_v47  ;;  %v1316_v58 = vmul.f32 %v1312_v48, %v2356_v40  ;;  %v279_v7 = vld [vmem:[%s2175_s13 + $0x78] sm:$0xff] }
 0x23d   : > { %v1195_v59 = vmul.f32 0.044715, %v1191_v49  ;;  %v1321_v60 = vadd.f32 %v1317_v50, %v2341_v3  ;;  %v1189_v61 = vmul.f32 %v2371_v51, %v2371_v51  ;;  %v1311_v62 = vmul.f32 %v2373_v54, %v2373_v54  ;;  %v1706_v0 = vpop.f32.mrb[12].mxu1 }
 0x23e   : > { %v1200_v63 = vadd.f32 %v1196_v55, %v2345_v29  ;;  %v1326_v9 = vmul.f32 0.7978846, %v1322_v56  ;;  %v1194_v10 = vmul.f32 %v1190_v57, %v2366_v47  ;;  %v1320_v11 = vmul.f32 0.044715, %v1316_v58  ;;  %v1144_v17 = vpop.f32.mrb[13].mxu1 }
 0x23f   : > { %v1199_v12 = vadd.f32 %v1195_v59, %v2349_v33  ;;  %v1325_v13 = vmul.f32 0.7978846, %v1321_v60  ;;  %v1193_v14 = vmul.f32 %v1189_v61, %v2371_v51  ;;  %v1315_v15 = vmul.f32 %v1311_v62, %v2373_v54 }
 0x240   : > { %v1204_v18 = vmul.f32 0.7978846, %v1200_v63  ;;  %1813 = vtanh.f32 %v1326_v9  ;;  %v1198_v2 = vmul.f32 0.044715, %v1194_v10  ;;  %v1324_v39 = vadd.f32 %v1320_v11, %v2356_v40 }
 0x241   : > { %v1203_v43 = vmul.f32 0.7978846, %v1199_v12  ;;  %1815 = vtanh.f32 %v1325_v13  ;;  %v1197_v20 = vmul.f32 0.044715, %v1193_v14  ;;  %v1319_v21 = vmul.f32 0.044715, %v1315_v15 }
 0x242   : > { %1817 = vtanh.f32 %v1204_v18  ;;  %v1202_v52 = vadd.f32 %v1198_v2, %v2366_v47  ;;  %v1328_v53 = vmul.f32 0.7978846, %v1324_v39  ;;  %v1229_v23 = vmul.f32 %v2339_v24, %v273_v16  ;;  %v1709_v1 = vpop.f32.mrb[14].mxu1 }
 0x243   : > { %1819 = vtanh.f32 %v1203_v43  ;;  %v1201_v25 = vadd.f32 %v1197_v20, %v2371_v51  ;;  %v1323_v26 = vadd.f32 %v1319_v21, %v2373_v54  ;;  %v1351_v27 = vmul.f32 0.81435716, %v2339_v24  ;;  %v2399_v32 = vpop.f32.mrb[15].mxu1 }
 0x244   : > { %v1206_v30 = vmul.f32 0.7978846, %v1202_v52  ;;  %1821 = vtanh.f32 %v1328_v53  ;;  %v1237_v34 = vmul.f32 1.4099663, %v1229_v23  ;;  %v1233_v4 = vmul.f32 %v1706_v0, %v277_v19 }
 0x245   : > { %v1205_v36 = vmul.f32 0.7978846, %v1201_v25  ;;  %v1327_v37 = vmul.f32 0.7978846, %v1323_v26  ;;  %v1355_v38 = vmul.f32 -0.33153582, %v1706_v0  ;;  %v1228_v41 = vmul.f32 %v2343_v28, %v272_v6 }
 0x246   : > { %1823 = vtanh.f32 %v1206_v30  ;;  %v1241_v42 = vmul.f32 -0.67729986, %v1233_v4  ;;  %v1350_v44 = vmul.f32 0.81435716, %v2343_v28  ;;  %v1232_v24 = vmul.f32 %v1144_v17, %v276_v31 }
 0x247   : > { %1825 = vtanh.f32 %v1205_v36  ;;  %v1359_v45 = vadd.f32 %v1355_v38, %v1351_v27  ;;  %v1236_v46 = vmul.f32 1.4099663, %v1228_v41  ;;  %v1354_v48 = vmul.f32 -0.33153582, %v1144_v17 }
 0x248   : > { %1827 = vtanh.f32 %v1327_v37  ;;  %v1245_v49 = vadd.f32 %v1241_v42, %v1237_v34  ;;  %v1240_v50 = vmul.f32 -0.67729986, %v1232_v24  ;;  %v1231_v55 = vmul.f32 %v2358_v5, %v275_v35 }
 0x249   : > { %v2406_v56 = vadd.f32 -0.022053286, %v1359_v45  ;;  %v1358_v57 = vadd.f32 %v1354_v48, %v1350_v44  ;;  %v1353_v58 = vmul.f32 0.81435716, %v2358_v5  ;;  %v1235_v59 = vmul.f32 %v1709_v1, %v279_v7 }
 0x24a   : > { %v1814_v60 = vpop.eup %1813  ;;  %v2409_v61 = vadd.f32 0.0037669428, %v1245_v49  ;;  %v1244_v28 = vadd.f32 %v1240_v50, %v1236_v46  ;;  %v1239_v62 = vmul.f32 1.4099663, %v1231_v55  ;;  %v1357_v63 = vmul.f32 -0.33153582, %v1709_v1 }
 0x24b   : > { %v1816_v9 = vpop.eup %1815  ;;  %v1334_v10 = vadd.f32 1.0, %v1814_v60  ;;  %v1367_v11 = vmul.f32 %v2406_v56, %v2406_v56  ;;  %v2413_v0 = vadd.f32 -0.022053286, %v1358_v57  ;;  %v1243_v12 = vmul.f32 -0.67729986, %v1235_v59  ;;  %v274_v50 = vld [vmem:[%s2175_s13 + $0x50] sm:$0xff] }
 0x24c   : > { %v1818_v13 = vpop.eup %1817  ;;  %v1333_v14 = vadd.f32 1.0, %v1816_v9  ;;  %v1253_v5 = vmul.f32 %v2409_v61, %v2409_v61  ;;  %v2417_v15 = vadd.f32 0.0037669428, %v1244_v28  ;;  %v1361_v16 = vadd.f32 %v1357_v63, %v1353_v58  ;;  %v278_v58 = vld [vmem:[%s2175_s13 + $0x70] sm:$0xff] }
 0x24d   : > { %v1820_v17 = vpop.eup %1819  ;;  %v1212_v18 = vadd.f32 1.0, %v1818_v13  ;;  %v1338_v2 = vmul.f32 0.5, %v1334_v10  ;;  %v1371_v39 = vmul.f32 %v1367_v11, %v2406_v56  ;;  %v1366_v19 = vmul.f32 %v2413_v0, %v2413_v0 }
 0x24e   : > { %v1822_v43 = vpop.eup %1821  ;;  %v1211_v20 = vadd.f32 1.0, %v1820_v17  ;;  %v1337_v21 = vmul.f32 0.5, %v1333_v14  ;;  %v1257_v52 = vmul.f32 %v1253_v5, %v2409_v61  ;;  %v1252_v53 = vmul.f32 %v2417_v15, %v2417_v15 }
 0x24f   : > { %v1216_v23 = vmul.f32 0.5, %v1212_v18  ;;  %v1342_v6 = vmul.f32 %v1338_v2, %v2337_v22  ;;  %v1336_v1 = vadd.f32 1.0, %v1822_v43  ;;  %v1375_v25 = vmul.f32 0.044715, %v1371_v39 }
 0x250   : > { %v1824_v26 = vpop.eup %1823  ;;  %v1215_v27 = vmul.f32 0.5, %v1211_v20  ;;  %v1341_v31 = vmul.f32 %v1337_v21, %v2341_v3  ;;  %v1261_v30 = vmul.f32 0.044715, %v1257_v52  ;;  %v1256_v34 = vmul.f32 %v1252_v53, %v2417_v15 }
 0x251   : > { %v1826_v4 = vpop.eup %1825  ;;  %v1220_v35 = vmul.f32 %v1216_v23, %v2345_v29  ;;  %1567 = vst.msk [vmem:[%s2431_s11 + $0x48] sm:$0xff] %vm1223_vm1, %v1342_v6  ;;  %v1214_v22 = vadd.f32 1.0, %v1824_v26  ;;  %v1340_v36 = vmul.f32 0.5, %v1336_v1  ;;  %v1379_v37 = vadd.f32 %v1375_v25, %v2406_v56 }
 0x252   : > { %v1828_v3 = vpop.eup %1827  ;;  %v1219_v38 = vmul.f32 %v1215_v27, %v2349_v33  ;;  %1566 = vst.msk [vmem:[%s2431_s11 + $0x40] sm:$0xff] %vm1223_vm1, %v1341_v31  ;;  %v1213_v29 = vadd.f32 1.0, %v1826_v4  ;;  %v1265_v41 = vadd.f32 %v1261_v30, %v2409_v61  ;;  %v1260_v42 = vmul.f32 0.044715, %v1256_v34 }
 0x253   : > { %1225 = vst.msk [vmem:[%s2431_s11 + $0x8] sm:$0xff] %vm1223_vm1, %v1220_v35  ;;  %v1218_v44 = vmul.f32 0.5, %v1214_v22  ;;  %v1344_v24 = vmul.f32 %v1340_v36, %v2356_v40  ;;  %v1335_v7 = vadd.f32 1.0, %v1828_v3  ;;  %v1383_v45 = vmul.f32 0.7978846, %v1379_v37 }
 0x254   : > { %1224 = vst.msk [vmem:[%s2431_s11] sm:$0xff] %vm1223_vm1, %v1219_v38  ;;  %v1217_v46 = vmul.f32 0.5, %v1213_v29  ;;  %v1269_v33 = vmul.f32 0.7978846, %v1265_v41  ;;  %v1264_v48 = vadd.f32 %v1260_v42, %v2417_v15  ;;  %v1370_v49 = vmul.f32 %v1366_v19, %v2413_v0 }
 0x255   : > { %v1222_v55 = vmul.f32 %v1218_v44, %v2366_v47  ;;  %1569 = vst.msk [vmem:[%s2431_s11 + $0x58] sm:$0xff] %vm1223_vm1, %v1344_v24  ;;  %v1339_v57 = vmul.f32 0.5, %v1335_v7  ;;  %1829 = vtanh.f32 %v1383_v45  ;;  %v1247_v40 = vadd.f32 %v1243_v12, %v1239_v62 }
 0x256   : > { %v1221_v59 = vmul.f32 %v1217_v46, %v2371_v51  ;;  %1831 = vtanh.f32 %v1269_v33  ;;  %v1268_v60 = vmul.f32 0.7978846, %v1264_v48  ;;  %v1374_v28 = vmul.f32 0.044715, %v1370_v49 }
 0x257   : > { %1227 = vst.msk [vmem:[%s2431_s11 + $0x18] sm:$0xff] %vm1223_vm1, %v1222_v55  ;;  %v1343_v63 = vmul.f32 %v1339_v57, %v2373_v54  ;;  %v2456_v9 = vadd.f32 0.0037669428, %v1247_v40  ;;  %v2458_v10 = vadd.f32 -0.022053286, %v1361_v16  ;;  %v1230_v47 = vmul.f32 %v2363_v8, %v274_v50 }
 0x258   : > { %1226 = vst.msk [vmem:[%s2431_s11 + $0x10] sm:$0xff] %vm1223_vm1, %v1221_v59  ;;  %1833 = vtanh.f32 %v1268_v60  ;;  %v1378_v62 = vadd.f32 %v1374_v28, %v2413_v0  ;;  %v1352_v51 = vmul.f32 0.81435716, %v2363_v8  ;;  %v1234_v11 = vmul.f32 %v2399_v32, %v278_v58 }
 0x259   : > { %1568 = vst.msk [vmem:[%s2431_s11 + $0x50] sm:$0xff] %vm1223_vm1, %v1343_v63  ;;  %v1255_v54 = vmul.f32 %v2456_v9, %v2456_v9  ;;  %v1369_v12 = vmul.f32 %v2458_v10, %v2458_v10  ;;  %v1238_v13 = vmul.f32 1.4099663, %v1230_v47  ;;  %v1356_v14 = vmul.f32 -0.33153582, %v2399_v32 }
 0x25a   : > { %v1382_v5 = vmul.f32 0.7978846, %v1378_v62  ;;  %v1242_v16 = vmul.f32 -0.67729986, %v1234_v11 }
 0x25b   : > { %v1259_v17 = vmul.f32 %v1255_v54, %v2456_v9  ;;  %v1373_v18 = vmul.f32 %v1369_v12, %v2458_v10  ;;  %v1360_v8 = vadd.f32 %v1356_v14, %v1352_v51 }
 0x25c   : > { %1835 = vtanh.f32 %v1382_v5  ;;  %v1246_v2 = vadd.f32 %v1242_v16, %v1238_v13 }
 0x25d   : > { %v1263_v39 = vmul.f32 0.044715, %v1259_v17  ;;  %v1377_v19 = vmul.f32 0.044715, %v1373_v18  ;;  %v1364_v43 = vadd.f32 -0.022053286, %v1360_v8 }
 0x25e   : > { %v1250_v20 = vadd.f32 0.0037669428, %v1246_v2 }
 0x25f   : > { %v1830_v21 = vpop.eup %1829  ;;  %v1267_v52 = vadd.f32 %v1263_v39, %v2456_v9  ;;  %v1381_v53 = vadd.f32 %v1377_v19, %v2458_v10  ;;  %v1368_v23 = vmul.f32 %v1364_v43, %v1364_v43 }
 0x260   : > { %v1832_v32 = vpop.eup %1831  ;;  %v1391_v6 = vadd.f32 1.0, %v1830_v21  ;;  %v1254_v1 = vmul.f32 %v1250_v20, %v1250_v20 }
 0x261   : > { %v1277_v25 = vadd.f32 1.0, %v1832_v32  ;;  %v1271_v26 = vmul.f32 0.7978846, %v1267_v52  ;;  %v1385_v27 = vmul.f32 0.7978846, %v1381_v53  ;;  %v1372_v31 = vmul.f32 %v1368_v23, %v1364_v43 }
 0x262   : > { %v1834_v30 = vpop.eup %1833  ;;  %v1395_v34 = vmul.f32 0.5, %v1391_v6  ;;  %v1258_v4 = vmul.f32 %v1254_v1, %v1250_v20 }
 0x263   : > { %v1281_v35 = vmul.f32 0.5, %v1277_v25  ;;  %v1276_v22 = vadd.f32 1.0, %v1834_v30  ;;  %1837 = vtanh.f32 %v1271_v26  ;;  %v1376_v36 = vmul.f32 0.044715, %v1372_v31 }
 0x264   : > { %v1399_v37 = vmul.f32 %v1395_v34, %v2406_v56  ;;  %1839 = vtanh.f32 %v1385_v27  ;;  %v1262_v3 = vmul.f32 0.044715, %v1258_v4 }
 0x265   : > { %v1285_v38 = vmul.f32 %v1281_v35, %v2409_v61  ;;  %v1280_v29 = vmul.f32 0.5, %v1276_v22  ;;  %v1380_v41 = vadd.f32 %v1376_v36, %v1364_v43 }
 0x266   : > { %v1836_v42 = vpop.eup %1835  ;;  %1571 = vst.msk [vmem:[%s2431_s11 + $0x68] sm:$0xff] %vm1223_vm1, %v1399_v37  ;;  %v1266_v44 = vadd.f32 %v1262_v3, %v1250_v20 }
 0x267   : > { %1563 = vst.msk [vmem:[%s2431_s11 + $0x28] sm:$0xff] %vm1223_vm1, %v1285_v38  ;;  %v1284_v24 = vmul.f32 %v1280_v29, %v2417_v15  ;;  %v1390_v7 = vadd.f32 1.0, %v1836_v42  ;;  %v1384_v45 = vmul.f32 0.7978846, %v1380_v41 }
 0x268   : > { %v1270_v46 = vmul.f32 0.7978846, %v1266_v44 }
 0x269   : > { %1562 = vst.msk [vmem:[%s2431_s11 + $0x20] sm:$0xff] %vm1223_vm1, %v1284_v24  ;;  %v1394_v56 = vmul.f32 0.5, %v1390_v7  ;;  %1841 = vtanh.f32 %v1384_v45 }
 0x26a   : > { %1843 = vtanh.f32 %v1270_v46 }
 0x26b   : > { %v1398_v61 = vmul.f32 %v1394_v56, %v2413_v0 }
 0x26d   : > { %v1838_v33 = vpop.eup %1837  ;;  %1570 = vst.msk [vmem:[%s2431_s11 + $0x60] sm:$0xff] %vm1223_vm1, %v1398_v61 }
 0x26e   : > { %v1840_v48 = vpop.eup %1839  ;;  %v1279_v49 = vadd.f32 1.0, %v1838_v33 }
 0x26f   : > { %v1393_v15 = vadd.f32 1.0, %v1840_v48 }
 0x270   : > { %v1283_v50 = vmul.f32 0.5, %v1279_v49 }
 0x271   : > { %v1397_v55 = vmul.f32 0.5, %v1393_v15 }
 0x272   : > { %v1287_v57 = vmul.f32 %v1283_v50, %v2456_v9 }
 0x273   : > { %v1842_v40 = vpop.eup %1841  ;;  %v1401_v58 = vmul.f32 %v1397_v55, %v2458_v10 }
 0x274   : > { %v1844_v59 = vpop.eup %1843  ;;  %1565 = vst.msk [vmem:[%s2431_s11 + $0x38] sm:$0xff] %vm1223_vm1, %v1287_v57  ;;  %v1392_v0 = vadd.f32 1.0, %v1842_v40 }
 0x275   : > { %1573 = vst.msk [vmem:[%s2431_s11 + $0x78] sm:$0xff] %vm1223_vm1, %v1401_v58  ;;  %v1278_v60 = vadd.f32 1.0, %v1844_v59 }
 0x276   : > { %v1396_v28 = vmul.f32 0.5, %v1392_v0 }
 0x277   : > { %v1282_v63 = vmul.f32 0.5, %v1278_v60 }
 0x278   : > { %v1400_v47 = vmul.f32 %v1396_v28, %v1364_v43 }
 0x279   : > { %v1286_v9 = vmul.f32 %v1282_v63, %v1250_v20 }
 0x27a   : > { %1572 = vst.msk [vmem:[%s2431_s11 + $0x70] sm:$0xff] %vm1223_vm1, %v1400_v47 }
 0x27b   : > { %1564 = vst.msk [vmem:[%s2431_s11 + $0x30] sm:$0xff] %vm1223_vm1, %v1286_v9 }
 0x27c   : > { %1918 = shalt.err (!%p1915_p11)
}
 0x27d   : > { %s1919_s30 = scalar_lea.hbm %s2500_s20, 2048  ;;  %s1923_s7 = scalar_lea.hbm %s2554_s4, 4096 }
 0x27e   : > { %p1920_p3 = scmp.ne.s32.totalorder %s2500_s20, %s1919_s30  ;;  %p1924_p2 = scmp.lt.u32.totalorder %s2500_s20, %s2554_s4 }
 0x27f   : > { %p1925_p4 = scmp.lt.u32.totalorder %s1923_s7, %s1919_s30  ;;  %p1927_p13 = scmp.lt.u32.totalorder %s1919_s30, %s2500_s20 }
 0x280   : > { %p1921_p8 = pnand %p1920_p3, %p2564_p1 }
 0x281   : > { %p1926_p6 = por %p1925_p4, %p1924_p2 }
 0x282   : > { %p1922_p0 = pneg %p1921_p8 }
 0x283   : > { %p1928_p12 = por %p1927_p13, %p1926_p6 }
 0x285   : > { %p1929_p10 = pnand %p1928_p12, %p1922_p0 }
 0x287   : > { %1932 = shalt.err (!%p1929_p10)
}
 0x288   : > { %s1982_s11 = smov 128   ;;  %s1983_s29 = smov 8  }
 0x289   : > { %1746 = dma.vmem_to_hbm [thread:$0]  (%p2564_p1), %s2502_s9, 2048, %s2500_s20, %s1408_s19, %s1982_s11, %s1982_s11, %s1983_s29  }
 0x28a PF: > { %s1436_s13 = sand.u32 1, %s1963_s15   ;;  %p2565_p5 = scmp.ne.s32.totalorder %s2560_s28, 0 }
 0x28b   : > { %p2566_p7 = scmp.ge.s32.totalorder %s1975_s18, 2  ;;  %s1437_s26 = scalar_lea.sflag [#allocation4], %s1436_s13 }
 0x28d   : > { %p1756_p9 = pnand %p2566_p7, %p2565_p5 }
 0x28f   : > { %1958 = dma.done.wait (!%p1756_p9), %s1437_s26, 2048  }
 0x290   : > { %1960 = vsyncadd (!%p1756_p9), %s1437_s26, 4294965248  ;;  %p20_p11 = scmp.ge.s32.totalorder %s2034_s21, 4   ;;  %s2567_s15 = smov %s1967_s16 }
 0x291   : > { %s2568_s16 = smov %s1971_s17  ;;  %s2569_s17 = smov %s2046_s24 }
 0x292   : > { %s2570_s18 = smov %s2034_s21  ;;  %22 = sbr.rel (!%p20_p11) target bundleno = 7 (0x7), region = 97 }
 0x299   :  { %1442 = vsyncpa [#allocation3], 1 }
 0x29a   :  { %1444 = vsyncpa [#allocation3 + $0x1], 1 }
 0x29b   :  { %1445 = vsyncpa [#allocation6], 1 }
 0x29c   :  { %1447 = vsyncpa [#allocation6 + $0x1], 1 }
 0x29d   :  { %1448 = vsyncpa [#allocation4], 1 }
 0x29e   :  { %1450 = vsyncpa [#allocation4 + $0x1], 1 }

</bundles_post_ra>
